<compile_context>
chip_gen: v7x
topology: tpu7x:2x2x1
jax: 0.10.0
libtpu: 0.0.40
codegen_flags: <defaults>
</compile_context>

<pallas_src>
import functools

import jax
import jax.numpy as jnp
from jax import lax
from jax.experimental import pallas as pl
from jax.experimental.pallas import tpu as pltpu

_LANES = 128


# ----------------------------------------------------------------------------
# In-kernel helpers (operate on jnp values loaded from VMEM refs)
# ----------------------------------------------------------------------------
def _cols(x, cin, circular):
    """im2col for the space-to-depth packed layout.

    x is (R, P*cin): row u holds P consecutive positions x[P*u .. P*u+P-1],
    each `cin` channels wide.  Returns (R, (P+2)*cin) columns
        [ x[P*u - 1] | x[P*u] ... x[P*u+P-1] | x[P*u + P] ].
    Neighbour taps come from an XLU sublane roll (pltpu.roll follows jnp.roll
    semantics: roll(x, 1)[u] = x[u-1]) plus a static lane slice.  For zero
    padding the wrapped boundary rows are masked to 0 (tiny (R, cin) masks).
    """
    r, pc = x.shape
    prev = pltpu.roll(x, 1, axis=0)[:, pc - cin:pc]        # x[P*u - 1]
    nxt = pltpu.roll(x, r - 1, axis=0)[:, 0:cin]           # x[P*u + P]
    if not circular:
        row = lax.broadcasted_iota(jnp.int32, (r, cin), 0)
        prev = jnp.where(row == 0, 0.0, prev)
        nxt = jnp.where(row == r - 1, 0.0, nxt)
    return jnp.concatenate([prev, x, nxt], axis=1)


def _mm(x, w, b=None, relu=False):
    y = jnp.dot(x, w, preferred_element_type=jnp.float32)
    if b is not None:
        y = y + b
    if relu:
        y = jnp.maximum(y, 0.0)
    return y


# ----------------------------------------------------------------------------
# The fused VQVAE forward kernel (one grid step == one batch element)
# ----------------------------------------------------------------------------
def _vqvae_kernel(x_ref, ws_ref, bs_ref, recon_ref, stats_ref, *, hd, cfg):
    nh, ne, ed, rows = cfg['nh'], cfg['ne'], cfg['ed'], cfg['rows']

    def wv(h):                      # weight slab -> (K, N) value, static slice
        off, k, n = h
        return ws_ref[off:off + k, 0:n]

    def bv(h):                      # bias slab -> (1, N) value, static slice
        row, n = h
        return bs_ref[row:row + 1, 0:n]

    def res_stack(t, layers):
        # TODO(synk): the reference Residual uses ReLU(inplace=True) inside its
        # nn.Sequential (which would mutate the skip branch before the add);
        # we implement the standard/intended residual semantics x + block(x).
        for hw3, hw1 in layers:
            h = jnp.maximum(t, 0.0)
            h = _mm(_cols(h, nh, True), wv(hw3), relu=True)   # 3x3 circular
            h = _mm(h, wv(hw1))                               # 1x1
            t = t + h
        return jnp.maximum(t, 0.0)

    x = x_ref[0]                                              # (R, 16) packed

    # ---- Encoder: 4x Conv1d(k=4, s=2, p=1, circular) -> conv_final -> res ---
    h = _mm(_cols(x, 1, True), wv(hd['e1']), bv(hd['e1b']), relu=True)
    h = _mm(_cols(h, nh // 2, True), wv(hd['e2']), bv(hd['e2b']), relu=True)
    h = _mm(_cols(h, nh, True), wv(hd['e3']), bv(hd['e3b']), relu=True)
    h = _mm(_cols(h, nh, True), wv(hd['e4']), bv(hd['e4b']), relu=True)
    h = _mm(_cols(h, nh, True), wv(hd['ef']), bv(hd['efb']))
    h = res_stack(h, hd['enc_res'])

    # ---- pre-VQ 1x1 conv ----------------------------------------------------
    z = _mm(h, wv(hd['pq']), bv(hd['pqb']))                   # (R, ed)

    # ---- Vector quantizer (per-batch partial stats) -------------------------
    dist = (jnp.sum(z * z, axis=1, keepdims=True) + bv(hd['e_sq'])
            - 2.0 * jnp.dot(z, wv(hd['emb_t']),
                            preferred_element_type=jnp.float32))   # (R, ne)
    col = lax.broadcasted_iota(jnp.int32, (rows, ne), 1)
    mind = jnp.min(dist, axis=1, keepdims=True)
    idx = jnp.min(jnp.where(dist <= mind, col, ne), axis=1, keepdims=True)
    enc = (col == idx).astype(jnp.float32)                    # one-hot (R, ne)
    q = jnp.dot(enc, wv(hd['emb']), preferred_element_type=jnp.float32)

    diff = q - z
    sse = jnp.sum(jnp.sum(diff * diff, axis=1, keepdims=True),
                  axis=0, keepdims=True)                      # (1, 1)
    counts = jnp.sum(enc, axis=0, keepdims=True)              # (1, ne)
    stats_ref[0] = jnp.concatenate([sse, counts], axis=1)     # (1, ne + 1)

    # TODO(synk): no straight-through estimator / stop_gradient; forward value
    # of `quantized` is q, which is what the decoder consumes below.

    # ---- Decoder: conv_init (zero pad) -> res -> 4x ConvTranspose1d ---------
    d = _mm(_cols(q, ed, False), wv(hd['di']), bv(hd['dib']))
    d = res_stack(d, hd['dec_res'])
    d = _mm(_cols(d, nh, False), wv(hd['t0']), bv(hd['t0b']), relu=True)
    d = _mm(_cols(d, nh, False), wv(hd['t1']), bv(hd['t1b']), relu=True)
    d = _mm(_cols(d, nh, False), wv(hd['t2']), bv(hd['t2b']), relu=True)
    d = _mm(_cols(d, nh // 2, False), wv(hd['t3']), bv(hd['t3b']))
    recon_ref[0] = d                                          # (R, 16) packed


# ----------------------------------------------------------------------------
# Host-side packing: torch-layout params -> one weight slab + one bias slab
# ----------------------------------------------------------------------------
def _pack_conv(w, P, stride, pad):
    """Conv1d weight (Cout, Cin, k) -> packed matmul weight ((P+2)*Cin, Q*Cout)
    for factor-P packed input rows; columns = [prev_last | cur(P) | next_first].
    out[Q*u + r] = sum_j W[:,:,j] . x[P*u + stride*r - pad + j]."""
    cout, cin, k = w.shape
    q = P // stride
    wt = jnp.transpose(w, (2, 1, 0)).astype(jnp.float32)      # (k, Cin, Cout)
    out = jnp.zeros(((P + 2) * cin, q * cout), jnp.float32)
    for r in range(q):
        for j in range(k):
            p = stride * r - pad + j                          # in slot, -1..P
            out = out.at[(p + 1) * cin:(p + 2) * cin,
                         r * cout:(r + 1) * cout].add(wt[j])
    return out


def _pack_convT(w, P):
    """ConvTranspose1d(k=4, s=2, p=1) weight (Cin, Cout, 4) -> packed weight
    ((P+2)*Cin, 2P*Cout) mapping factor-P packed rows to factor-2P packed rows:
    out[2n]   = x[n-1] @ W[:,:,3] + x[n] @ W[:,:,1]
    out[2n+1] = x[n]   @ W[:,:,2] + x[n+1] @ W[:,:,0]."""
    cin, cout, _ = w.shape
    wf = w.astype(jnp.float32)
    out = jnp.zeros(((P + 2) * cin, 2 * P * cout), jnp.float32)
    for r in range(P):
        for p, j, qq in ((r - 1, 3, 2 * r), (r, 1, 2 * r),
                         (r, 2, 2 * r + 1), (r + 1, 0, 2 * r + 1)):
            out = out.at[(p + 1) * cin:(p + 2) * cin,
                         qq * cout:(qq + 1) * cout].add(wf[:, :, j])
    return out


class _Slab:
    """Accumulates (K, N) matrices into one (sum Kpad, 128) f32 slab; returns
    static (row_offset, K, N) handles carved with ref slices in the kernel."""

    def __init__(self):
        self.parts = []
        self.rows = 0

    def add(self, mat):
        k, n = mat.shape
        kp = ((k + 7) // 8) * 8
        buf = jnp.zeros((kp, _LANES), jnp.float32).at[:k, :n].set(
            mat.astype(jnp.float32))
        handle = (self.rows, k, n)
        self.parts.append(buf)
        self.rows += kp
        return handle

    def finalize(self):
        return jnp.concatenate(self.parts, axis=0)


class _BiasSlab:
    def __init__(self):
        self.rows = []

    def add(self, vec):                                       # vec: (1, N)
        n = vec.shape[-1]
        buf = jnp.zeros((1, _LANES), jnp.float32).at[0, :n].set(
            vec.reshape(-1).astype(jnp.float32))
        handle = (len(self.rows), n)
        self.rows.append(buf)
        return handle

    def finalize(self):
        out = jnp.concatenate(self.rows, axis=0)
        pad = ((out.shape[0] + 7) // 8) * 8 - out.shape[0]
        if pad:
            out = jnp.concatenate(
                [out, jnp.zeros((pad, _LANES), jnp.float32)], axis=0)
        return out


def pack_params(p, *, seq_len):
    assert seq_len % 16 == 0
    nh = p['enc_conv2_w'].shape[0]                 # num_hiddens
    nrh = p['enc_res'][0][0].shape[0]              # num_residual_hiddens
    ne, ed = p['emb'].shape
    rows = seq_len // 16                           # latent length per example
    pack0 = seq_len // rows                        # = 16

    ws, bs = _Slab(), _BiasSlab()
    hd = {}

    def conv_b(b, reps):
        return bs.add(jnp.tile(b.reshape(1, -1), (1, reps)))

    # encoder: 4 stride-2 convs; packing factor halves at every layer
    P = pack0
    for name, key in (('e1', 'enc_conv1'), ('e2', 'enc_conv2'),
                      ('e3', 'enc_conv3'), ('e4', 'enc_conv4')):
        hd[name] = ws.add(_pack_conv(p[key + '_w'], P, 2, 1))
        hd[name + 'b'] = conv_b(p[key + '_b'], P // 2)
        P //= 2
    assert P == 1                                  # fully unpacked at latent res
    hd['ef'] = ws.add(_pack_conv(p['enc_convf_w'], 1, 1, 1))
    hd['efb'] = conv_b(p['enc_convf_b'], 1)
    hd['enc_res'] = [(ws.add(_pack_conv(w3, 1, 1, 1)), ws.add(w1[:, :, 0].T))
                     for (w3, w1) in p['enc_res']]
    hd['pq'] = ws.add(p['prevq_w'][:, :, 0].T)
    hd['pqb'] = conv_b(p['prevq_b'], 1)

    emb = p['emb']
    hd['emb_t'] = ws.add(emb.T)                    # (ed, ne)
    hd['emb'] = ws.add(emb)                        # (ne, ed)
    hd['e_sq'] = bs.add(jnp.sum(emb * emb, axis=1).reshape(1, -1))

    hd['di'] = ws.add(_pack_conv(p['dec_init_w'], 1, 1, 1))
    hd['dib'] = conv_b(p['dec_init_b'], 1)
    hd['dec_res'] = [(ws.add(_pack_conv(w3, 1, 1, 1)), ws.add(w1[:, :, 0].T))
                     for (w3, w1) in p['dec_res']]

    # decoder: 4 ConvTranspose layers; packing factor doubles at every layer
    P = 1
    for name, key in (('t0', 'dec_t0'), ('t1', 'dec_t1'),
                      ('t2', 'dec_t2'), ('t3', 'dec_t3')):
        hd[name] = ws.add(_pack_convT(p[key + '_w'], P))
        hd[name + 'b'] = conv_b(p[key + '_b'], 2 * P)
        P *= 2

    cfg = dict(nh=nh, nrh=nrh, ne=ne, ed=ed, rows=rows, pack=pack0)
    return ws.finalize(), bs.finalize(), hd, cfg


# ----------------------------------------------------------------------------
# Full VQVAE forward (one pallas_call, grid over batch)
# ----------------------------------------------------------------------------
def vqvae_forward(w_slab, b_slab, x, *, hd, cfg, commitment_cost):
    bsz, _, seq = x.shape
    rows, pack, ne, ed = cfg['rows'], cfg['pack'], cfg['ne'], cfg['ed']
    assert seq == rows * pack

    x_packed = x.reshape(bsz, rows, pack)          # (B,1,L)->(B,R,16) metadata

    kernel = functools.partial(_vqvae_kernel, hd=hd, cfg=cfg)
    recon, stats = pl.pallas_call(
        kernel,
        grid=(bsz,),
        in_specs=[
            pl.BlockSpec((1, rows, pack), lambda b: (b, 0, 0)),
            pl.BlockSpec(w_slab.shape, lambda b: (0, 0)),   # resident weights
            pl.BlockSpec(b_slab.shape, lambda b: (0, 0)),   # resident biases
        ],
        out_specs=(
            pl.BlockSpec((1, rows, pack), lambda b: (b, 0, 0)),
            pl.BlockSpec((1, 1, ne + 1), lambda b: (b, 0, 0)),
        ),
        out_shape=(
            jax.ShapeDtypeStruct((bsz, rows, pack), jnp.float32),
            jax.ShapeDtypeStruct((bsz, 1, ne + 1), jnp.float32),
        ),
        compiler_params=pltpu.CompilerParams(
            dimension_semantics=("parallel",)),
    )(x_packed, w_slab, b_slab)

    # Host-side finalization of the tiny per-batch VQ partials.
    m = bsz * rows
    mse = jnp.sum(stats[:, 0, 0]) / float(m * ed)
    loss = (1.0 + commitment_cost) * mse           # q_latent + cc * e_latent
    avg = jnp.sum(stats[:, 0, 1:], axis=0) / float(m)
    perplexity = jnp.exp(-jnp.sum(avg * jnp.log(avg + 1e-10)))

    x_recon = recon.reshape(bsz, 1, seq)           # un-pack: metadata reshape
    return loss, x_recon, perplexity


# ----------------------------------------------------------------------------
# Deterministic parameter initialization (shapes from the module __init__)
# ----------------------------------------------------------------------------
def init_params(num_hiddens, num_residual_layers, num_residual_hiddens,
                num_embeddings, embedding_dim, seed=42):
    keys = iter(jax.random.split(jax.random.PRNGKey(seed), 128))

    def u(shape, bound):
        return jax.random.uniform(next(keys), shape, jnp.float32, -bound, bound)

    def conv(cout, cin, k, bias=True):
        bound = 1.0 / float(cin * k) ** 0.5
        w = u((cout, cin, k), bound)
        b = u((cout,), bound) if bias else None
        return w, b

    def convT(cin, cout, k):
        bound = 1.0 / float(cout * k) ** 0.5
        return u((cin, cout, k), bound), u((cout,), bound)

    nh, nrh = num_hiddens, num_residual_hiddens
    p = {}
    p['enc_conv1_w'], p['enc_conv1_b'] = conv(nh // 2, 1, 4)
    p['enc_conv2_w'], p['enc_conv2_b'] = conv(nh, nh // 2, 4)
    p['enc_conv3_w'], p['enc_conv3_b'] = conv(nh, nh, 4)
    p['enc_conv4_w'], p['enc_conv4_b'] = conv(nh, nh, 4)
    p['enc_convf_w'], p['enc_convf_b'] = conv(nh, nh, 3)
    p['enc_res'] = [(conv(nrh, nh, 3, bias=False)[0],
                     conv(nh, nrh, 1, bias=False)[0])
                    for _ in range(num_residual_layers)]
    p['prevq_w'], p['prevq_b'] = conv(embedding_dim, nh, 1)
    p['emb'] = u((num_embeddings, embedding_dim), 1.0 / num_embeddings)
    p['dec_init_w'], p['dec_init_b'] = conv(nh, embedding_dim, 3)
    p['dec_res'] = [(conv(nrh, nh, 3, bias=False)[0],
                     conv(nh, nrh, 1, bias=False)[0])
                    for _ in range(num_residual_layers)]
    p['dec_t0_w'], p['dec_t0_b'] = convT(nh, nh, 4)
    p['dec_t1_w'], p['dec_t1_b'] = convT(nh, nh, 4)
    p['dec_t2_w'], p['dec_t2_b'] = convT(nh, nh // 2, 4)
    p['dec_t3_w'], p['dec_t3_b'] = convT(nh // 2, 1, 4)
    return p


# ----------------------------------------------------------------------------
if __name__ == "__main__":
    num_hiddens = 32
    num_residual_layers = 2
    num_residual_hiddens = 8
    num_embeddings = 16
    embedding_dim = 8
    commitment_cost = 0.25

    B, L = 2, 128                  # encoder downsamples x16 -> latent length 8
    params = init_params(num_hiddens, num_residual_layers, num_residual_hiddens,
                         num_embeddings, embedding_dim)
    w_slab, b_slab, hd, cfg = pack_params(params, seq_len=L)
    x = jax.random.normal(jax.random.PRNGKey(0), (B, 1, L), jnp.float32)

    fwd = jax.jit(functools.partial(vqvae_forward, hd=hd, cfg=cfg,
                                    commitment_cost=commitment_cost))
    loss, x_recon, perplexity = fwd(w_slab, b_slab, x)
    jax.block_until_ready((loss, x_recon, perplexity))

    assert x_recon.shape == (B, 1, L), x_recon.shape
    assert bool(jnp.isfinite(loss)) and bool(jnp.isfinite(perplexity))
    assert bool(jnp.all(jnp.isfinite(x_recon)))
    print("KERNEL_OK")
</pallas_src>

<mosaic_0001>
module attributes {stable_mosaic.version = 11 : i64} {
  func.func @_vqvae_kernel(%arg0: i32, %arg1: memref<1x8x16xf32, #tpu.memory_space<vmem>>, %arg2: memref<1672x128xf32, #tpu.memory_space<vmem>>, %arg3: memref<16x128xf32, #tpu.memory_space<vmem>>, %arg4: memref<1x8x16xf32, #tpu.memory_space<vmem>>, %arg5: memref<1x1x17xf32, #tpu.memory_space<vmem>>) attributes {dimension_semantics = [#tpu.dimension_semantics<parallel>], iteration_bounds = array<i64: 2>, scalar_prefetch = 0 : i64, scratch_operands = 0 : i64, tpu.core_type = #tpu.core_type<tc>, window_params = [{transform_indices = @transform_0, window_bounds = array<i64: 1, 8, 16>}, {pipeline_mode = #tpu.pipeline_mode<synchronous>, transform_indices = @transform_1, window_bounds = array<i64: 1672, 128>}, {pipeline_mode = #tpu.pipeline_mode<synchronous>, transform_indices = @transform_2, window_bounds = array<i64: 16, 128>}, {transform_indices = @transform_3, window_bounds = array<i64: 1, 8, 16>}, {transform_indices = @transform_4, window_bounds = array<i64: 1, 1, 17>}]} {
    %c0 = arith.constant 0 : index
    %c0_0 = arith.constant 0 : index
    %c0_1 = arith.constant 0 : index
    %0 = vector.load %arg1[%c0, %c0_0, %c0_1] : memref<1x8x16xf32, #tpu.memory_space<vmem>>, vector<1x8x16xf32>
    %1 = vector.shape_cast %0 : vector<1x8x16xf32> to vector<8x16xf32>
    %c1_i32 = arith.constant 1 : i32
    %2 = tpu.dynamic_rotate %1 by %c1_i32 dim 0 : vector<8x16xf32>, i32 -> vector<8x16xf32>
    %3 = vector.extract_strided_slice %2 {offsets = [0, 15], sizes = [8, 1], strides = [1, 1]} : vector<8x16xf32> to vector<8x1xf32>
    %c7_i32 = arith.constant 7 : i32
    %4 = tpu.dynamic_rotate %1 by %c7_i32 dim 0 : vector<8x16xf32>, i32 -> vector<8x16xf32>
    %5 = vector.extract_strided_slice %4 {offsets = [0, 0], sizes = [8, 1], strides = [1, 1]} : vector<8x16xf32> to vector<8x1xf32>
    %6 = tpu.concatenate %3, %1, %5 in 1 : vector<8x1xf32>, vector<8x16xf32>, vector<8x1xf32> -> vector<8x18xf32>
    %c0_2 = arith.constant 0 : index
    %c0_3 = arith.constant 0 : index
    %7 = vector.load %arg2[%c0_2, %c0_3] : memref<1672x128xf32, #tpu.memory_space<vmem>>, vector<18x128xf32>
    %c0_4 = arith.constant 0 : index
    %c0_5 = arith.constant 0 : index
    %8 = vector.load %arg3[%c0_4, %c0_5] : memref<16x128xf32, #tpu.memory_space<vmem>>, vector<1x128xf32>
    %cst = arith.constant dense<0.000000e+00> : vector<8x128xf32>
    %9 = tpu.matmul %6, %7, %cst {dimension_numbers = #tpu.dot_dimension_numbers<[1], [0], [0], [1], [0, 0, 1, 1], [], []>} : vector<8x18xf32>, vector<18x128xf32>, vector<8x128xf32> -> vector<8x128xf32>
    %10 = vector.broadcast %8 : vector<1x128xf32> to vector<8x128xf32>
    %11 = arith.addf %9, %10 : vector<8x128xf32>
    %cst_6 = arith.constant 0.000000e+00 : f32
    %12 = vector.broadcast %cst_6 : f32 to vector<8x128xf32>
    %13 = arith.maximumf %11, %12 : vector<8x128xf32>
    %c1_i32_7 = arith.constant 1 : i32
    %14 = tpu.dynamic_rotate %13 by %c1_i32_7 dim 0 : vector<8x128xf32>, i32 -> vector<8x128xf32>
    %15 = vector.extract_strided_slice %14 {offsets = [0, 112], sizes = [8, 16], strides = [1, 1]} : vector<8x128xf32> to vector<8x16xf32>
    %c7_i32_8 = arith.constant 7 : i32
    %16 = tpu.dynamic_rotate %13 by %c7_i32_8 dim 0 : vector<8x128xf32>, i32 -> vector<8x128xf32>
    %17 = vector.extract_strided_slice %16 {offsets = [0, 0], sizes = [8, 16], strides = [1, 1]} : vector<8x128xf32> to vector<8x16xf32>
    %18 = tpu.concatenate %15, %13, %17 in 1 : vector<8x16xf32>, vector<8x128xf32>, vector<8x16xf32> -> vector<8x160xf32>
    %c24 = arith.constant 24 : index
    %c0_9 = arith.constant 0 : index
    %19 = vector.load %arg2[%c24, %c0_9] : memref<1672x128xf32, #tpu.memory_space<vmem>>, vector<160x128xf32>
    %c1 = arith.constant 1 : index
    %c0_10 = arith.constant 0 : index
    %20 = vector.load %arg3[%c1, %c0_10] : memref<16x128xf32, #tpu.memory_space<vmem>>, vector<1x128xf32>
    %cst_11 = arith.constant dense<0.000000e+00> : vector<8x128xf32>
    %21 = tpu.matmul %18, %19, %cst_11 {dimension_numbers = #tpu.dot_dimension_numbers<[1], [0], [0], [1], [0, 0, 1, 1], [], []>} : vector<8x160xf32>, vector<160x128xf32>, vector<8x128xf32> -> vector<8x128xf32>
    %22 = vector.broadcast %20 : vector<1x128xf32> to vector<8x128xf32>
    %23 = arith.addf %21, %22 : vector<8x128xf32>
    %cst_12 = arith.constant 0.000000e+00 : f32
    %24 = vector.broadcast %cst_12 : f32 to vector<8x128xf32>
    %25 = arith.maximumf %23, %24 : vector<8x128xf32>
    %c1_i32_13 = arith.constant 1 : i32
    %26 = tpu.dynamic_rotate %25 by %c1_i32_13 dim 0 : vector<8x128xf32>, i32 -> vector<8x128xf32>
    %27 = vector.extract_strided_slice %26 {offsets = [0, 96], sizes = [8, 32], strides = [1, 1]} : vector<8x128xf32> to vector<8x32xf32>
    %c7_i32_14 = arith.constant 7 : i32
    %28 = tpu.dynamic_rotate %25 by %c7_i32_14 dim 0 : vector<8x128xf32>, i32 -> vector<8x128xf32>
    %29 = vector.extract_strided_slice %28 {offsets = [0, 0], sizes = [8, 32], strides = [1, 1]} : vector<8x128xf32> to vector<8x32xf32>
    %30 = tpu.concatenate %27, %25, %29 in 1 : vector<8x32xf32>, vector<8x128xf32>, vector<8x32xf32> -> vector<8x192xf32>
    %c184 = arith.constant 184 : index
    %c0_15 = arith.constant 0 : index
    %31 = vector.load %arg2[%c184, %c0_15] : memref<1672x128xf32, #tpu.memory_space<vmem>>, vector<192x64xf32>
    %c2 = arith.constant 2 : index
    %c0_16 = arith.constant 0 : index
    %32 = vector.load %arg3[%c2, %c0_16] : memref<16x128xf32, #tpu.memory_space<vmem>>, vector<1x64xf32>
    %cst_17 = arith.constant dense<0.000000e+00> : vector<8x64xf32>
    %33 = tpu.matmul %30, %31, %cst_17 {dimension_numbers = #tpu.dot_dimension_numbers<[1], [0], [0], [1], [0, 0, 1, 1], [], []>} : vector<8x192xf32>, vector<192x64xf32>, vector<8x64xf32> -> vector<8x64xf32>
    %34 = vector.broadcast %32 : vector<1x64xf32> to vector<8x64xf32>
    %35 = arith.addf %33, %34 : vector<8x64xf32>
    %cst_18 = arith.constant 0.000000e+00 : f32
    %36 = vector.broadcast %cst_18 : f32 to vector<8x64xf32>
    %37 = arith.maximumf %35, %36 : vector<8x64xf32>
    %c1_i32_19 = arith.constant 1 : i32
    %38 = tpu.dynamic_rotate %37 by %c1_i32_19 dim 0 : vector<8x64xf32>, i32 -> vector<8x64xf32>
    %39 = vector.extract_strided_slice %38 {offsets = [0, 32], sizes = [8, 32], strides = [1, 1]} : vector<8x64xf32> to vector<8x32xf32>
    %c7_i32_20 = arith.constant 7 : i32
    %40 = tpu.dynamic_rotate %37 by %c7_i32_20 dim 0 : vector<8x64xf32>, i32 -> vector<8x64xf32>
    %41 = vector.extract_strided_slice %40 {offsets = [0, 0], sizes = [8, 32], strides = [1, 1]} : vector<8x64xf32> to vector<8x32xf32>
    %42 = tpu.concatenate %39, %37, %41 in 1 : vector<8x32xf32>, vector<8x64xf32>, vector<8x32xf32> -> vector<8x128xf32>
    %c376 = arith.constant 376 : index
    %c0_21 = arith.constant 0 : index
    %43 = vector.load %arg2[%c376, %c0_21] : memref<1672x128xf32, #tpu.memory_space<vmem>>, vector<128x32xf32>
    %c3 = arith.constant 3 : index
    %c0_22 = arith.constant 0 : index
    %44 = vector.load %arg3[%c3, %c0_22] : memref<16x128xf32, #tpu.memory_space<vmem>>, vector<1x32xf32>
    %cst_23 = arith.constant dense<0.000000e+00> : vector<8x32xf32>
    %45 = tpu.matmul %42, %43, %cst_23 {dimension_numbers = #tpu.dot_dimension_numbers<[1], [0], [0], [1], [0, 0, 1, 1], [], []>} : vector<8x128xf32>, vector<128x32xf32>, vector<8x32xf32> -> vector<8x32xf32>
    %46 = vector.broadcast %44 : vector<1x32xf32> to vector<8x32xf32>
    %47 = arith.addf %45, %46 : vector<8x32xf32>
    %cst_24 = arith.constant 0.000000e+00 : f32
    %48 = vector.broadcast %cst_24 : f32 to vector<8x32xf32>
    %49 = arith.maximumf %47, %48 : vector<8x32xf32>
    %c1_i32_25 = arith.constant 1 : i32
    %50 = tpu.dynamic_rotate %49 by %c1_i32_25 dim 0 : vector<8x32xf32>, i32 -> vector<8x32xf32>
    %c7_i32_26 = arith.constant 7 : i32
    %51 = tpu.dynamic_rotate %49 by %c7_i32_26 dim 0 : vector<8x32xf32>, i32 -> vector<8x32xf32>
    %52 = tpu.concatenate %50, %49, %51 in 1 : vector<8x32xf32>, vector<8x32xf32>, vector<8x32xf32> -> vector<8x96xf32>
    %c504 = arith.constant 504 : index
    %c0_27 = arith.constant 0 : index
    %53 = vector.load %arg2[%c504, %c0_27] : memref<1672x128xf32, #tpu.memory_space<vmem>>, vector<96x32xf32>
    %c4 = arith.constant 4 : index
    %c0_28 = arith.constant 0 : index
    %54 = vector.load %arg3[%c4, %c0_28] : memref<16x128xf32, #tpu.memory_space<vmem>>, vector<1x32xf32>
    %cst_29 = arith.constant dense<0.000000e+00> : vector<8x32xf32>
    %55 = tpu.matmul %52, %53, %cst_29 {dimension_numbers = #tpu.dot_dimension_numbers<[1], [0], [0], [1], [0, 0, 1, 1], [], []>} : vector<8x96xf32>, vector<96x32xf32>, vector<8x32xf32> -> vector<8x32xf32>
    %56 = vector.broadcast %54 : vector<1x32xf32> to vector<8x32xf32>
    %57 = arith.addf %55, %56 : vector<8x32xf32>
    %cst_30 = arith.constant 0.000000e+00 : f32
    %58 = vector.broadcast %cst_30 : f32 to vector<8x32xf32>
    %59 = arith.maximumf %57, %58 : vector<8x32xf32>
    %c1_i32_31 = arith.constant 1 : i32
    %60 = tpu.dynamic_rotate %59 by %c1_i32_31 dim 0 : vector<8x32xf32>, i32 -> vector<8x32xf32>
    %c7_i32_32 = arith.constant 7 : i32
    %61 = tpu.dynamic_rotate %59 by %c7_i32_32 dim 0 : vector<8x32xf32>, i32 -> vector<8x32xf32>
    %62 = tpu.concatenate %60, %59, %61 in 1 : vector<8x32xf32>, vector<8x32xf32>, vector<8x32xf32> -> vector<8x96xf32>
    %c600 = arith.constant 600 : index
    %c0_33 = arith.constant 0 : index
    %63 = vector.load %arg2[%c600, %c0_33] : memref<1672x128xf32, #tpu.memory_space<vmem>>, vector<96x8xf32>
    %cst_34 = arith.constant dense<0.000000e+00> : vector<8x8xf32>
    %64 = tpu.matmul %62, %63, %cst_34 {dimension_numbers = #tpu.dot_dimension_numbers<[1], [0], [0], [1], [0, 0, 1, 1], [], []>} : vector<8x96xf32>, vector<96x8xf32>, vector<8x8xf32> -> vector<8x8xf32>
    %cst_35 = arith.constant 0.000000e+00 : f32
    %65 = vector.broadcast %cst_35 : f32 to vector<8x8xf32>
    %66 = arith.maximumf %64, %65 : vector<8x8xf32>
    %c696 = arith.constant 696 : index
    %c0_36 = arith.constant 0 : index
    %67 = vector.load %arg2[%c696, %c0_36] : memref<1672x128xf32, #tpu.memory_space<vmem>>, vector<8x32xf32>
    %cst_37 = arith.constant dense<0.000000e+00> : vector<8x32xf32>
    %68 = tpu.matmul %66, %67, %cst_37 {dimension_numbers = #tpu.dot_dimension_numbers<[1], [0], [0], [1], [0, 0, 1, 1], [], []>} : vector<8x8xf32>, vector<8x32xf32>, vector<8x32xf32> -> vector<8x32xf32>
    %69 = arith.addf %57, %68 : vector<8x32xf32>
    %cst_38 = arith.constant 0.000000e+00 : f32
    %70 = vector.broadcast %cst_38 : f32 to vector<8x32xf32>
    %71 = arith.maximumf %69, %70 : vector<8x32xf32>
    %c1_i32_39 = arith.constant 1 : i32
    %72 = tpu.dynamic_rotate %71 by %c1_i32_39 dim 0 : vector<8x32xf32>, i32 -> vector<8x32xf32>
    %c7_i32_40 = arith.constant 7 : i32
    %73 = tpu.dynamic_rotate %71 by %c7_i32_40 dim 0 : vector<8x32xf32>, i32 -> vector<8x32xf32>
    %74 = tpu.concatenate %72, %71, %73 in 1 : vector<8x32xf32>, vector<8x32xf32>, vector<8x32xf32> -> vector<8x96xf32>
    %c704 = arith.constant 704 : index
    %c0_41 = arith.constant 0 : index
    %75 = vector.load %arg2[%c704, %c0_41] : memref<1672x128xf32, #tpu.memory_space<vmem>>, vector<96x8xf32>
    %cst_42 = arith.constant dense<0.000000e+00> : vector<8x8xf32>
    %76 = tpu.matmul %74, %75, %cst_42 {dimension_numbers = #tpu.dot_dimension_numbers<[1], [0], [0], [1], [0, 0, 1, 1], [], []>} : vector<8x96xf32>, vector<96x8xf32>, vector<8x8xf32> -> vector<8x8xf32>
    %cst_43 = arith.constant 0.000000e+00 : f32
    %77 = vector.broadcast %cst_43 : f32 to vector<8x8xf32>
    %78 = arith.maximumf %76, %77 : vector<8x8xf32>
    %c800 = arith.constant 800 : index
    %c0_44 = arith.constant 0 : index
    %79 = vector.load %arg2[%c800, %c0_44] : memref<1672x128xf32, #tpu.memory_space<vmem>>, vector<8x32xf32>
    %cst_45 = arith.constant dense<0.000000e+00> : vector<8x32xf32>
    %80 = tpu.matmul %78, %79, %cst_45 {dimension_numbers = #tpu.dot_dimension_numbers<[1], [0], [0], [1], [0, 0, 1, 1], [], []>} : vector<8x8xf32>, vector<8x32xf32>, vector<8x32xf32> -> vector<8x32xf32>
    %81 = arith.addf %69, %80 : vector<8x32xf32>
    %cst_46 = arith.constant 0.000000e+00 : f32
    %82 = vector.broadcast %cst_46 : f32 to vector<8x32xf32>
    %83 = arith.maximumf %81, %82 : vector<8x32xf32>
    %c808 = arith.constant 808 : index
    %c0_47 = arith.constant 0 : index
    %84 = vector.load %arg2[%c808, %c0_47] : memref<1672x128xf32, #tpu.memory_space<vmem>>, vector<32x8xf32>
    %c5 = arith.constant 5 : index
    %c0_48 = arith.constant 0 : index
    %85 = vector.load %arg3[%c5, %c0_48] : memref<16x128xf32, #tpu.memory_space<vmem>>, vector<1x8xf32>
    %cst_49 = arith.constant dense<0.000000e+00> : vector<8x8xf32>
    %86 = tpu.matmul %83, %84, %cst_49 {dimension_numbers = #tpu.dot_dimension_numbers<[1], [0], [0], [1], [0, 0, 1, 1], [], []>} : vector<8x32xf32>, vector<32x8xf32>, vector<8x8xf32> -> vector<8x8xf32>
    %87 = vector.broadcast %85 : vector<1x8xf32> to vector<8x8xf32>
    %88 = arith.addf %86, %87 : vector<8x8xf32>
    %89 = arith.mulf %88, %88 : vector<8x8xf32>
    %cst_50 = arith.constant dense<0.000000e+00> : vector<8xf32>
    %90 = vector.multi_reduction <add>, %89, %cst_50 [1] : vector<8x8xf32> to vector<8xf32>
    %91 = vector.shape_cast %90 : vector<8xf32> to vector<8x1xf32>
    %c6 = arith.constant 6 : index
    %c0_51 = arith.constant 0 : index
    %92 = vector.load %arg3[%c6, %c0_51] : memref<16x128xf32, #tpu.memory_space<vmem>>, vector<1x16xf32>
    %93 = vector.broadcast %91 : vector<8x1xf32> to vector<8x16xf32>
    %94 = vector.broadcast %92 : vector<1x16xf32> to vector<8x16xf32>
    %95 = arith.addf %93, %94 : vector<8x16xf32>
    %c840 = arith.constant 840 : index
    %c0_52 = arith.constant 0 : index
    %96 = vector.load %arg2[%c840, %c0_52] : memref<1672x128xf32, #tpu.memory_space<vmem>>, vector<8x16xf32>
    %cst_53 = arith.constant dense<0.000000e+00> : vector<8x16xf32>
    %97 = tpu.matmul %88, %96, %cst_53 {dimension_numbers = #tpu.dot_dimension_numbers<[1], [0], [0], [1], [0, 0, 1, 1], [], []>} : vector<8x8xf32>, vector<8x16xf32>, vector<8x16xf32> -> vector<8x16xf32>
    %cst_54 = arith.constant 2.000000e+00 : f32
    %98 = vector.broadcast %cst_54 : f32 to vector<8x16xf32>
    %99 = arith.mulf %98, %97 : vector<8x16xf32>
    %100 = arith.subf %95, %99 : vector<8x16xf32>
    %101 = tpu.iota {dimensions = array<i32: 1>} : vector<8x16xi32>
    %cst_55 = arith.constant dense<0x7F800000> : vector<8xf32>
    %102 = vector.multi_reduction <minimumf>, %100, %cst_55 [1] : vector<8x16xf32> to vector<8xf32>
    %103 = vector.shape_cast %102 : vector<8xf32> to vector<8x1xf32>
    %104 = vector.broadcast %103 : vector<8x1xf32> to vector<8x16xf32>
    %105 = arith.cmpf ole, %100, %104 : vector<8x16xf32>
    %c16_i32 = arith.constant 16 : i32
    %106 = vector.broadcast %c16_i32 : i32 to vector<8x16xi32>
    %107 = arith.select %105, %101, %106 : vector<8x16xi1>, vector<8x16xi32>
    %cst_56 = arith.constant dense<2147483647> : vector<8xi32>
    %108 = vector.multi_reduction <minsi>, %107, %cst_56 [1] : vector<8x16xi32> to vector<8xi32>
    %109 = vector.shape_cast %108 : vector<8xi32> to vector<8x1xi32>
    %110 = vector.broadcast %109 : vector<8x1xi32> to vector<8x16xi32>
    %111 = arith.cmpi eq, %101, %110 : vector<8x16xi32>
    %112 = arith.extui %111 : vector<8x16xi1> to vector<8x16xi32>
    %113 = arith.sitofp %112 : vector<8x16xi32> to vector<8x16xf32>
    %c848 = arith.constant 848 : index
    %c0_57 = arith.constant 0 : index
    %114 = vector.load %arg2[%c848, %c0_57] : memref<1672x128xf32, #tpu.memory_space<vmem>>, vector<16x8xf32>
    %cst_58 = arith.constant dense<0.000000e+00> : vector<8x8xf32>
    %115 = tpu.matmul %113, %114, %cst_58 {dimension_numbers = #tpu.dot_dimension_numbers<[1], [0], [0], [1], [0, 0, 1, 1], [], []>} : vector<8x16xf32>, vector<16x8xf32>, vector<8x8xf32> -> vector<8x8xf32>
    %116 = arith.subf %115, %88 : vector<8x8xf32>
    %117 = arith.mulf %116, %116 : vector<8x8xf32>
    %cst_59 = arith.constant dense<0.000000e+00> : vector<8xf32>
    %118 = vector.multi_reduction <add>, %117, %cst_59 [1] : vector<8x8xf32> to vector<8xf32>
    %119 = vector.shape_cast %118 : vector<8xf32> to vector<8x1xf32>
    %cst_60 = arith.constant dense<0.000000e+00> : vector<1xf32>
    %120 = vector.multi_reduction <add>, %119, %cst_60 [0] : vector<8x1xf32> to vector<1xf32>
    %121 = vector.shape_cast %120 : vector<1xf32> to vector<1x1xf32>
    %cst_61 = arith.constant dense<0.000000e+00> : vector<16xf32>
    %122 = vector.multi_reduction <add>, %113, %cst_61 [0] : vector<8x16xf32> to vector<16xf32>
    %123 = vector.shape_cast %122 : vector<16xf32> to vector<1x16xf32>
    %124 = tpu.concatenate %121, %123 in 1 : vector<1x1xf32>, vector<1x16xf32> -> vector<1x17xf32>
    %c0_62 = arith.constant 0 : index
    %c0_63 = arith.constant 0 : index
    %c0_64 = arith.constant 0 : index
    %125 = vector.load %arg5[%c0_62, %c0_63, %c0_64] : memref<1x1x17xf32, #tpu.memory_space<vmem>>, vector<1x1x17xf32>
    %126 = vector.shape_cast %125 : vector<1x1x17xf32> to vector<1x17xf32>
    %127 = vector.shape_cast %124 : vector<1x17xf32> to vector<1x1x17xf32>
    tpu.vector_store %arg5[%c0_62, %c0_63, %c0_64], %127 {strides = array<i32>} : memref<1x1x17xf32, #tpu.memory_space<vmem>>, vector<1x1x17xf32>,
    %c1_i32_65 = arith.constant 1 : i32
    %128 = tpu.dynamic_rotate %115 by %c1_i32_65 dim 0 : vector<8x8xf32>, i32 -> vector<8x8xf32>
    %c7_i32_66 = arith.constant 7 : i32
    %129 = tpu.dynamic_rotate %115 by %c7_i32_66 dim 0 : vector<8x8xf32>, i32 -> vector<8x8xf32>
    %130 = tpu.iota {dimensions = array<i32: 0>} : vector<8x8xi32>
    %c0_i32 = arith.constant 0 : i32
    %131 = vector.broadcast %c0_i32 : i32 to vector<8x8xi32>
    %132 = arith.cmpi eq, %130, %131 : vector<8x8xi32>
    %cst_67 = arith.constant 0.000000e+00 : f32
    %133 = vector.broadcast %cst_67 : f32 to vector<8x8xf32>
    %134 = arith.select %132, %133, %128 : vector<8x8xi1>, vector<8x8xf32>
    %c7_i32_68 = arith.constant 7 : i32
    %135 = vector.broadcast %c7_i32_68 : i32 to vector<8x8xi32>
    %136 = arith.cmpi eq, %130, %135 : vector<8x8xi32>
    %cst_69 = arith.constant 0.000000e+00 : f32
    %137 = vector.broadcast %cst_69 : f32 to vector<8x8xf32>
    %138 = arith.select %136, %137, %129 : vector<8x8xi1>, vector<8x8xf32>
    %139 = tpu.concatenate %134, %115, %138 in 1 : vector<8x8xf32>, vector<8x8xf32>, vector<8x8xf32> -> vector<8x24xf32>
    %c864 = arith.constant 864 : index
    %c0_70 = arith.constant 0 : index
    %140 = vector.load %arg2[%c864, %c0_70] : memref<1672x128xf32, #tpu.memory_space<vmem>>, vector<24x32xf32>
    %c7 = arith.constant 7 : index
    %c0_71 = arith.constant 0 : index
    %141 = vector.load %arg3[%c7, %c0_71] : memref<16x128xf32, #tpu.memory_space<vmem>>, vector<1x32xf32>
    %cst_72 = arith.constant dense<0.000000e+00> : vector<8x32xf32>
    %142 = tpu.matmul %139, %140, %cst_72 {dimension_numbers = #tpu.dot_dimension_numbers<[1], [0], [0], [1], [0, 0, 1, 1], [], []>} : vector<8x24xf32>, vector<24x32xf32>, vector<8x32xf32> -> vector<8x32xf32>
    %143 = vector.broadcast %141 : vector<1x32xf32> to vector<8x32xf32>
    %144 = arith.addf %142, %143 : vector<8x32xf32>
    %cst_73 = arith.constant 0.000000e+00 : f32
    %145 = vector.broadcast %cst_73 : f32 to vector<8x32xf32>
    %146 = arith.maximumf %144, %145 : vector<8x32xf32>
    %c1_i32_74 = arith.constant 1 : i32
    %147 = tpu.dynamic_rotate %146 by %c1_i32_74 dim 0 : vector<8x32xf32>, i32 -> vector<8x32xf32>
    %c7_i32_75 = arith.constant 7 : i32
    %148 = tpu.dynamic_rotate %146 by %c7_i32_75 dim 0 : vector<8x32xf32>, i32 -> vector<8x32xf32>
    %149 = tpu.concatenate %147, %146, %148 in 1 : vector<8x32xf32>, vector<8x32xf32>, vector<8x32xf32> -> vector<8x96xf32>
    %c888 = arith.constant 888 : index
    %c0_76 = arith.constant 0 : index
    %150 = vector.load %arg2[%c888, %c0_76] : memref<1672x128xf32, #tpu.memory_space<vmem>>, vector<96x8xf32>
    %cst_77 = arith.constant dense<0.000000e+00> : vector<8x8xf32>
    %151 = tpu.matmul %149, %150, %cst_77 {dimension_numbers = #tpu.dot_dimension_numbers<[1], [0], [0], [1], [0, 0, 1, 1], [], []>} : vector<8x96xf32>, vector<96x8xf32>, vector<8x8xf32> -> vector<8x8xf32>
    %cst_78 = arith.constant 0.000000e+00 : f32
    %152 = vector.broadcast %cst_78 : f32 to vector<8x8xf32>
    %153 = arith.maximumf %151, %152 : vector<8x8xf32>
    %c984 = arith.constant 984 : index
    %c0_79 = arith.constant 0 : index
    %154 = vector.load %arg2[%c984, %c0_79] : memref<1672x128xf32, #tpu.memory_space<vmem>>, vector<8x32xf32>
    %cst_80 = arith.constant dense<0.000000e+00> : vector<8x32xf32>
    %155 = tpu.matmul %153, %154, %cst_80 {dimension_numbers = #tpu.dot_dimension_numbers<[1], [0], [0], [1], [0, 0, 1, 1], [], []>} : vector<8x8xf32>, vector<8x32xf32>, vector<8x32xf32> -> vector<8x32xf32>
    %156 = arith.addf %144, %155 : vector<8x32xf32>
    %cst_81 = arith.constant 0.000000e+00 : f32
    %157 = vector.broadcast %cst_81 : f32 to vector<8x32xf32>
    %158 = arith.maximumf %156, %157 : vector<8x32xf32>
    %c1_i32_82 = arith.constant 1 : i32
    %159 = tpu.dynamic_rotate %158 by %c1_i32_82 dim 0 : vector<8x32xf32>, i32 -> vector<8x32xf32>
    %c7_i32_83 = arith.constant 7 : i32
    %160 = tpu.dynamic_rotate %158 by %c7_i32_83 dim 0 : vector<8x32xf32>, i32 -> vector<8x32xf32>
    %161 = tpu.concatenate %159, %158, %160 in 1 : vector<8x32xf32>, vector<8x32xf32>, vector<8x32xf32> -> vector<8x96xf32>
    %c992 = arith.constant 992 : index
    %c0_84 = arith.constant 0 : index
    %162 = vector.load %arg2[%c992, %c0_84] : memref<1672x128xf32, #tpu.memory_space<vmem>>, vector<96x8xf32>
    %cst_85 = arith.constant dense<0.000000e+00> : vector<8x8xf32>
    %163 = tpu.matmul %161, %162, %cst_85 {dimension_numbers = #tpu.dot_dimension_numbers<[1], [0], [0], [1], [0, 0, 1, 1], [], []>} : vector<8x96xf32>, vector<96x8xf32>, vector<8x8xf32> -> vector<8x8xf32>
    %cst_86 = arith.constant 0.000000e+00 : f32
    %164 = vector.broadcast %cst_86 : f32 to vector<8x8xf32>
    %165 = arith.maximumf %163, %164 : vector<8x8xf32>
    %c1088 = arith.constant 1088 : index
    %c0_87 = arith.constant 0 : index
    %166 = vector.load %arg2[%c1088, %c0_87] : memref<1672x128xf32, #tpu.memory_space<vmem>>, vector<8x32xf32>
    %cst_88 = arith.constant dense<0.000000e+00> : vector<8x32xf32>
    %167 = tpu.matmul %165, %166, %cst_88 {dimension_numbers = #tpu.dot_dimension_numbers<[1], [0], [0], [1], [0, 0, 1, 1], [], []>} : vector<8x8xf32>, vector<8x32xf32>, vector<8x32xf32> -> vector<8x32xf32>
    %168 = arith.addf %156, %167 : vector<8x32xf32>
    %cst_89 = arith.constant 0.000000e+00 : f32
    %169 = vector.broadcast %cst_89 : f32 to vector<8x32xf32>
    %170 = arith.maximumf %168, %169 : vector<8x32xf32>
    %c1_i32_90 = arith.constant 1 : i32
    %171 = tpu.dynamic_rotate %170 by %c1_i32_90 dim 0 : vector<8x32xf32>, i32 -> vector<8x32xf32>
    %c7_i32_91 = arith.constant 7 : i32
    %172 = tpu.dynamic_rotate %170 by %c7_i32_91 dim 0 : vector<8x32xf32>, i32 -> vector<8x32xf32>
    %173 = tpu.iota {dimensions = array<i32: 0>} : vector<8x32xi32>
    %c0_i32_92 = arith.constant 0 : i32
    %174 = vector.broadcast %c0_i32_92 : i32 to vector<8x32xi32>
    %175 = arith.cmpi eq, %173, %174 : vector<8x32xi32>
    %cst_93 = arith.constant 0.000000e+00 : f32
    %176 = vector.broadcast %cst_93 : f32 to vector<8x32xf32>
    %177 = arith.select %175, %176, %171 : vector<8x32xi1>, vector<8x32xf32>
    %c7_i32_94 = arith.constant 7 : i32
    %178 = vector.broadcast %c7_i32_94 : i32 to vector<8x32xi32>
    %179 = arith.cmpi eq, %173, %178 : vector<8x32xi32>
    %cst_95 = arith.constant 0.000000e+00 : f32
    %180 = vector.broadcast %cst_95 : f32 to vector<8x32xf32>
    %181 = arith.select %179, %180, %172 : vector<8x32xi1>, vector<8x32xf32>
    %182 = tpu.concatenate %177, %170, %181 in 1 : vector<8x32xf32>, vector<8x32xf32>, vector<8x32xf32> -> vector<8x96xf32>
    %c1096 = arith.constant 1096 : index
    %c0_96 = arith.constant 0 : index
    %183 = vector.load %arg2[%c1096, %c0_96] : memref<1672x128xf32, #tpu.memory_space<vmem>>, vector<96x64xf32>
    %c8 = arith.constant 8 : index
    %c0_97 = arith.constant 0 : index
    %184 = vector.load %arg3[%c8, %c0_97] : memref<16x128xf32, #tpu.memory_space<vmem>>, vector<1x64xf32>
    %cst_98 = arith.constant dense<0.000000e+00> : vector<8x64xf32>
    %185 = tpu.matmul %182, %183, %cst_98 {dimension_numbers = #tpu.dot_dimension_numbers<[1], [0], [0], [1], [0, 0, 1, 1], [], []>} : vector<8x96xf32>, vector<96x64xf32>, vector<8x64xf32> -> vector<8x64xf32>
    %186 = vector.broadcast %184 : vector<1x64xf32> to vector<8x64xf32>
    %187 = arith.addf %185, %186 : vector<8x64xf32>
    %cst_99 = arith.constant 0.000000e+00 : f32
    %188 = vector.broadcast %cst_99 : f32 to vector<8x64xf32>
    %189 = arith.maximumf %187, %188 : vector<8x64xf32>
    %c1_i32_100 = arith.constant 1 : i32
    %190 = tpu.dynamic_rotate %189 by %c1_i32_100 dim 0 : vector<8x64xf32>, i32 -> vector<8x64xf32>
    %191 = vector.extract_strided_slice %190 {offsets = [0, 32], sizes = [8, 32], strides = [1, 1]} : vector<8x64xf32> to vector<8x32xf32>
    %c7_i32_101 = arith.constant 7 : i32
    %192 = tpu.dynamic_rotate %189 by %c7_i32_101 dim 0 : vector<8x64xf32>, i32 -> vector<8x64xf32>
    %193 = vector.extract_strided_slice %192 {offsets = [0, 0], sizes = [8, 32], strides = [1, 1]} : vector<8x64xf32> to vector<8x32xf32>
    %194 = tpu.iota {dimensions = array<i32: 0>} : vector<8x32xi32>
    %c0_i32_102 = arith.constant 0 : i32
    %195 = vector.broadcast %c0_i32_102 : i32 to vector<8x32xi32>
    %196 = arith.cmpi eq, %194, %195 : vector<8x32xi32>
    %cst_103 = arith.constant 0.000000e+00 : f32
    %197 = vector.broadcast %cst_103 : f32 to vector<8x32xf32>
    %198 = arith.select %196, %197, %191 : vector<8x32xi1>, vector<8x32xf32>
    %c7_i32_104 = arith.constant 7 : i32
    %199 = vector.broadcast %c7_i32_104 : i32 to vector<8x32xi32>
    %200 = arith.cmpi eq, %194, %199 : vector<8x32xi32>
    %cst_105 = arith.constant 0.000000e+00 : f32
    %201 = vector.broadcast %cst_105 : f32 to vector<8x32xf32>
    %202 = arith.select %200, %201, %193 : vector<8x32xi1>, vector<8x32xf32>
    %203 = tpu.concatenate %198, %189, %202 in 1 : vector<8x32xf32>, vector<8x64xf32>, vector<8x32xf32> -> vector<8x128xf32>
    %c1192 = arith.constant 1192 : index
    %c0_106 = arith.constant 0 : index
    %204 = vector.load %arg2[%c1192, %c0_106] : memref<1672x128xf32, #tpu.memory_space<vmem>>, vector<128x128xf32>
    %c9 = arith.constant 9 : index
    %c0_107 = arith.constant 0 : index
    %205 = vector.load %arg3[%c9, %c0_107] : memref<16x128xf32, #tpu.memory_space<vmem>>, vector<1x128xf32>
    %cst_108 = arith.constant dense<0.000000e+00> : vector<8x128xf32>
    %206 = tpu.matmul %203, %204, %cst_108 {dimension_numbers = #tpu.dot_dimension_numbers<[1], [0], [0], [1], [0, 0, 1, 1], [], []>} : vector<8x128xf32>, vector<128x128xf32>, vector<8x128xf32> -> vector<8x128xf32>
    %207 = vector.broadcast %205 : vector<1x128xf32> to vector<8x128xf32>
    %208 = arith.addf %206, %207 : vector<8x128xf32>
    %cst_109 = arith.constant 0.000000e+00 : f32
    %209 = vector.broadcast %cst_109 : f32 to vector<8x128xf32>
    %210 = arith.maximumf %208, %209 : vector<8x128xf32>
    %c1_i32_110 = arith.constant 1 : i32
    %211 = tpu.dynamic_rotate %210 by %c1_i32_110 dim 0 : vector<8x128xf32>, i32 -> vector<8x128xf32>
    %212 = vector.extract_strided_slice %211 {offsets = [0, 96], sizes = [8, 32], strides = [1, 1]} : vector<8x128xf32> to vector<8x32xf32>
    %c7_i32_111 = arith.constant 7 : i32
    %213 = tpu.dynamic_rotate %210 by %c7_i32_111 dim 0 : vector<8x128xf32>, i32 -> vector<8x128xf32>
    %214 = vector.extract_strided_slice %213 {offsets = [0, 0], sizes = [8, 32], strides = [1, 1]} : vector<8x128xf32> to vector<8x32xf32>
    %215 = tpu.iota {dimensions = array<i32: 0>} : vector<8x32xi32>
    %c0_i32_112 = arith.constant 0 : i32
    %216 = vector.broadcast %c0_i32_112 : i32 to vector<8x32xi32>
    %217 = arith.cmpi eq, %215, %216 : vector<8x32xi32>
    %cst_113 = arith.constant 0.000000e+00 : f32
    %218 = vector.broadcast %cst_113 : f32 to vector<8x32xf32>
    %219 = arith.select %217, %218, %212 : vector<8x32xi1>, vector<8x32xf32>
    %c7_i32_114 = arith.constant 7 : i32
    %220 = vector.broadcast %c7_i32_114 : i32 to vector<8x32xi32>
    %221 = arith.cmpi eq, %215, %220 : vector<8x32xi32>
    %cst_115 = arith.constant 0.000000e+00 : f32
    %222 = vector.broadcast %cst_115 : f32 to vector<8x32xf32>
    %223 = arith.select %221, %222, %214 : vector<8x32xi1>, vector<8x32xf32>
    %224 = tpu.concatenate %219, %210, %223 in 1 : vector<8x32xf32>, vector<8x128xf32>, vector<8x32xf32> -> vector<8x192xf32>
    %c1320 = arith.constant 1320 : index
    %c0_116 = arith.constant 0 : index
    %225 = vector.load %arg2[%c1320, %c0_116] : memref<1672x128xf32, #tpu.memory_space<vmem>>, vector<192x128xf32>
    %c10 = arith.constant 10 : index
    %c0_117 = arith.constant 0 : index
    %226 = vector.load %arg3[%c10, %c0_117] : memref<16x128xf32, #tpu.memory_space<vmem>>, vector<1x128xf32>
    %cst_118 = arith.constant dense<0.000000e+00> : vector<8x128xf32>
    %227 = tpu.matmul %224, %225, %cst_118 {dimension_numbers = #tpu.dot_dimension_numbers<[1], [0], [0], [1], [0, 0, 1, 1], [], []>} : vector<8x192xf32>, vector<192x128xf32>, vector<8x128xf32> -> vector<8x128xf32>
    %228 = vector.broadcast %226 : vector<1x128xf32> to vector<8x128xf32>
    %229 = arith.addf %227, %228 : vector<8x128xf32>
    %cst_119 = arith.constant 0.000000e+00 : f32
    %230 = vector.broadcast %cst_119 : f32 to vector<8x128xf32>
    %231 = arith.maximumf %229, %230 : vector<8x128xf32>
    %c1_i32_120 = arith.constant 1 : i32
    %232 = tpu.dynamic_rotate %231 by %c1_i32_120 dim 0 : vector<8x128xf32>, i32 -> vector<8x128xf32>
    %233 = vector.extract_strided_slice %232 {offsets = [0, 112], sizes = [8, 16], strides = [1, 1]} : vector<8x128xf32> to vector<8x16xf32>
    %c7_i32_121 = arith.constant 7 : i32
    %234 = tpu.dynamic_rotate %231 by %c7_i32_121 dim 0 : vector<8x128xf32>, i32 -> vector<8x128xf32>
    %235 = vector.extract_strided_slice %234 {offsets = [0, 0], sizes = [8, 16], strides = [1, 1]} : vector<8x128xf32> to vector<8x16xf32>
    %236 = tpu.iota {dimensions = array<i32: 0>} : vector<8x16xi32>
    %c0_i32_122 = arith.constant 0 : i32
    %237 = vector.broadcast %c0_i32_122 : i32 to vector<8x16xi32>
    %238 = arith.cmpi eq, %236, %237 : vector<8x16xi32>
    %cst_123 = arith.constant 0.000000e+00 : f32
    %239 = vector.broadcast %cst_123 : f32 to vector<8x16xf32>
    %240 = arith.select %238, %239, %233 : vector<8x16xi1>, vector<8x16xf32>
    %c7_i32_124 = arith.constant 7 : i32
    %241 = vector.broadcast %c7_i32_124 : i32 to vector<8x16xi32>
    %242 = arith.cmpi eq, %236, %241 : vector<8x16xi32>
    %cst_125 = arith.constant 0.000000e+00 : f32
    %243 = vector.broadcast %cst_125 : f32 to vector<8x16xf32>
    %244 = arith.select %242, %243, %235 : vector<8x16xi1>, vector<8x16xf32>
    %245 = tpu.concatenate %240, %231, %244 in 1 : vector<8x16xf32>, vector<8x128xf32>, vector<8x16xf32> -> vector<8x160xf32>
    %c1512 = arith.constant 1512 : index
    %c0_126 = arith.constant 0 : index
    %246 = vector.load %arg2[%c1512, %c0_126] : memref<1672x128xf32, #tpu.memory_space<vmem>>, vector<160x16xf32>
    %c11 = arith.constant 11 : index
    %c0_127 = arith.constant 0 : index
    %247 = vector.load %arg3[%c11, %c0_127] : memref<16x128xf32, #tpu.memory_space<vmem>>, vector<1x16xf32>
    %cst_128 = arith.constant dense<0.000000e+00> : vector<8x16xf32>
    %248 = tpu.matmul %245, %246, %cst_128 {dimension_numbers = #tpu.dot_dimension_numbers<[1], [0], [0], [1], [0, 0, 1, 1], [], []>} : vector<8x160xf32>, vector<160x16xf32>, vector<8x16xf32> -> vector<8x16xf32>
    %249 = vector.broadcast %247 : vector<1x16xf32> to vector<8x16xf32>
    %250 = arith.addf %248, %249 : vector<8x16xf32>
    %c0_129 = arith.constant 0 : index
    %c0_130 = arith.constant 0 : index
    %c0_131 = arith.constant 0 : index
    %251 = vector.load %arg4[%c0_129, %c0_130, %c0_131] : memref<1x8x16xf32, #tpu.memory_space<vmem>>, vector<1x8x16xf32>
    %252 = vector.shape_cast %251 : vector<1x8x16xf32> to vector<8x16xf32>
    %253 = vector.shape_cast %250 : vector<8x16xf32> to vector<1x8x16xf32>
    tpu.vector_store %arg4[%c0_129, %c0_130, %c0_131], %253 {strides = array<i32>} : memref<1x8x16xf32, #tpu.memory_space<vmem>>, vector<1x8x16xf32>,
    return
  }
  func.func @transform_0(%arg0: i32) -> (i32, i32, i32) {
    %c0_i32 = arith.constant 0 : i32
    %c0_i32_0 = arith.constant 0 : i32
    %c0_i32_1 = arith.constant 0 : i32
    return %arg0, %c0_i32, %c0_i32_0 : i32, i32, i32
  }
  func.func @transform_1(%arg0: i32) -> (i32, i32) {
    %c0_i32 = arith.constant 0 : i32
    %c0_i32_0 = arith.constant 0 : i32
    %c0_i32_1 = arith.constant 0 : i32
    return %c0_i32, %c0_i32_0 : i32, i32
  }
  func.func @transform_2(%arg0: i32) -> (i32, i32) {
    %c0_i32 = arith.constant 0 : i32
    %c0_i32_0 = arith.constant 0 : i32
    %c0_i32_1 = arith.constant 0 : i32
    return %c0_i32, %c0_i32_0 : i32, i32
  }
  func.func @transform_3(%arg0: i32) -> (i32, i32, i32) {
    %c0_i32 = arith.constant 0 : i32
    %c0_i32_0 = arith.constant 0 : i32
    %c0_i32_1 = arith.constant 0 : i32
    return %arg0, %c0_i32, %c0_i32_0 : i32, i32, i32
  }
  func.func @transform_4(%arg0: i32) -> (i32, i32, i32) {
    %c0_i32 = arith.constant 0 : i32
    %c0_i32_0 = arith.constant 0 : i32
    %c0_i32_1 = arith.constant 0 : i32
    return %arg0, %c0_i32, %c0_i32_0 : i32, i32, i32
  }
}

</mosaic_0001>

<bundles_post_ra>
// kernel: vqvae_forward.1
= control target key start
LH: loop header
LB: loop body
LE: loop exit
PB: predicated region body
PF: predicated region fallthrough
CT: control target
= control target key end

     0   :  { %10 = vsyncpa [#allocation3], 0  ;;  %s3305_s15 = smov 0   ;;  %s3673_s0 = inlined_call_operand.vmem [shape: f32[2,8,16], index: 0, kind: input, shape index: {}]   ;;  %s3674_s1 = inlined_call_operand.hbm [shape: f32[1672,128], index: 1, kind: input, shape index: {}]   ;;  %s3675_s2 = inlined_call_operand.vmem [shape: f32[16,128], index: 2, kind: input, shape index: {}]   ;;  %s3676_s3 = inlined_call_operand.vmem [shape: f32[2,8,16], index: 3, kind: output, shape index: {0}]   ;;  %s3677_s4 = inlined_call_operand.vmem [shape: f32[2,1,17], index: 4, kind: output, shape index: {1}]  }
   0x1 LB: > { %s3311_s16 = sadd.s32 4294967295, %s3264_s15   ;;  %p2408_p0 = scmp.ge.s32.totalorder %s3264_s15, 1  ;;  %s3264_s15 = sphi %s3305_s15, %s16_s15  }
   0x2   : > { %p141_p1 = scmp.lt.s32.totalorder %s3264_s15, 3  ;;  %s3266_s17 = smov [#allocation2]  }
   0x3   : > { %s153_s18 = sshll.u32 %s3266_s17, 4  ;;  %p3678_p3 = scmp.eq.s32.totalorder %s3311_s16, 0  ;;  %s154_s18 = int_to_ptr.vmem [resolvable:$true] %s153_s18 }
   0x4   : > { %p3315_p2 = pnand %p2408_p0, %p141_p1  ;;  %s3226_s23 = scalar_lea.hbm %s3674_s1, 26752 }
   0x5   : > { %p3227_p6 = scmp.ne.s32.totalorder %s3674_s1, %s3226_s23  ;;  %p3233_p10 = scmp.lt.u32.totalorder %s3226_s23, %s3674_s1 }
   0x6   : > { %s3680_s19 = scalar_select %p3315_p2, 1, 0 }
   0x7   : > { %p3188_p4 = pneg %p3315_p2 }
   0x9   : > { %p3324_p5 = pnand %p3678_p3, %p3188_p4 }
   0xb   : > { %p3228_p7 = pneg %p3324_p5 }
   0xd   : > { %p3229_p8 = pnand %p3228_p7, %p3227_p6 }
   0xf   : > { %p3230_p9 = pneg %p3229_p8 }
  0x11   : > { %p3235_p11 = pnand %p3233_p10, %p3230_p9 }
  0x13   : > { %3238 = shalt.err (!%p3235_p11)
}
  0x14   : > { %s3239_s28 = scalar_lea.vmem %s154_s18, 26752  ;;  %p3247_p1 = scmp.lt.s32.totalorder %s154_s18, %s154_s18 }
  0x15   : > { %p3240_p12 = scmp.ne.s32.totalorder %s154_s18, %s3239_s28  ;;  %p3248_p4 = scmp.lt.s32.totalorder %s3239_s28, %s3239_s28 }
  0x17   : > { %p3242_p13 = pnand %p3240_p12, %p3228_p7  ;;  %p3249_p3 = por %p3248_p4, %p3247_p1 }
  0x19   : > { %p3243_p0 = pneg %p3242_p13 }
  0x1b   : > { %p3250_p2 = pnand %p3249_p3, %p3243_p0 }
  0x1d   : > { %3253 = shalt.err (!%p3250_p2)
}
  0x1e   : > { %s3267_s29 = smov 128   ;;  %s3268_s30 = smov 8  }
  0x1f   : > { %3191 = dma.hbm_to_vmem [thread:$0]  (!%p3324_p5), %s3674_s1, 26752, %s154_s18, [#allocation3], %s3267_s29, %s3267_s29, %s3268_s30  }
  0x20   : > { %p3682_p6 = scmp.ne.s32.totalorder %s3680_s19, 0 }
  0x21   : > { %p3683_p8 = scmp.eq.s32.totalorder (!%p3682_p6), %s3311_s16, 0 }
  0x22   : > { %179 = sbr.rel (%p3682_p6) target bundleno = 6689 (0x1a21), region = 32 }
  0x29   : > { %3259 = dma.done.wait (%p3683_p8), [#allocation3], 26752   ;;  %p3684_p7 = pmov %p3683_p8 }
  0x2a   : > { %p206_p2 = scmp.lt.s32.totalorder %s3311_s16, 1  ;;  %v3269_v0 = vmov 0.0|0.0   ;;  %vm3270_vm0 = vmmov 0   ;;  %v3271_v1 = vmov 0.0   ;;  %v236_v3 = vld [vmem:[#allocation2] sm:$0xff]  ;;  %v237_v4 = vld [vmem:[#allocation2 + $0x8] sm:$0xff] }
  0x2b   : > { %3261 = vsyncadd (%p3684_p7), [#allocation3], 4294940544  ;;  %2881 = vmatprep.subr.bf16.mxu0 %v3269_v0  ;;  %2884 = vmatprep.subr.bf16.mxu1 %v3269_v0  ;;  %v2882_v7 = vpack.c.bf16 %v237_v4, %v236_v3  ;;  %s3272_s11 = smov 113   ;;  %s3273_s12 = smov 17   ;;  %v238_v8 = vld [vmem:[#allocation2 + $0x10] sm:$0x3] }
  0x2c   : > { %s3686_s16 = smov (!%p206_p2, %s3311_s16), 1  ;;  %2594 = vmatprep.mubr.msk.f32.mxu0 %vm3270_vm0, %v3271_v1  ;;  %vm248_vm1 = vcmask 1041408   ;;  %s3274_s13 = smov 1   ;;  %vm232_vm2 = vcmask 7168   ;;  %vm234_vm3 = vcmask 138240   ;;  %vm244_vm4 = vcmask 146432  }
  0x2d   : > { %s2413_s7 = sshll.u32 %s3686_s16, 3  ;;  %2883 = vmatpush3.bf16.msra.mxu0 %v2882_v7  ;;  %v340_v14 = vld [vmem:[#allocation2 + $0x18] sm:$0xff]  ;;  %v341_v15 = vld [vmem:[#allocation2 + $0x20] sm:$0xff]  ;;  %v342_v16 = vld [vmem:[#allocation2 + $0x28] sm:$0xff]  ;;  %s3275_s18 = smov 16   ;;  %vm337_vm5 = vcmask 130048  }
  0x2e   : > { %s209_s10 = scalar_lea.vmem %s3673_s0, %s2413_s7  ;;  %2592 = vmatprep.subr.mxu0 %v3271_v1  ;;  %v2885_v17 = vpack.c.bf16 %v341_v15, %v340_v14  ;;  %v343_v18 = vld [vmem:[#allocation2 + $0x30] sm:$0xff]  ;;  %v344_v20 = vld [vmem:[#allocation2 + $0x38] sm:$0xff]  ;;  %v345_v21 = vld [vmem:[#allocation2 + $0x40] sm:$0xff]  ;;  %vm365_vm6 = vcmask 261120   ;;  %s3276_s21 = smov 32   ;;  %vm485_vm7 = vcmask 523264  }
  0x2f   : > { %v217_v2 = vld [vmem:[%s209_s10] sm:$0xff]  ;;  %v2888_v19 = vpack.c.bf16 %v343_v18, %v342_v16  ;;  %v2891_v22 = vpack.c.bf16 %v345_v21, %v344_v20  ;;  %v346_v23 = vld [vmem:[#allocation2 + $0x48] sm:$0xff]  ;;  %v347_v24 = vld [vmem:[#allocation2 + $0x50] sm:$0xff]  ;;  %s3277_s24 = smov 96   ;;  %vm575_vm8 = vcmask 785408   ;;  %s3278_s27 = smov 64  }
  0x30   : > { %v218_v5 = vrot.slane %v217_v2, 7  ;;  %v219_v6 = vrot.slane %v217_v2, 1  ;;  %2886 = vmatpush1.bf16.msra.mxu1 %v2885_v17  ;;  %v2894_v25 = vpack.c.bf16 %v347_v24, %v346_v23  ;;  %v348_v26 = vld [vmem:[#allocation2 + $0x58] sm:$0xff]  ;;  %v349_v27 = vld [vmem:[#allocation2 + $0x60] sm:$0xff]  ;;  %v350_v29 = vld [vmem:[#allocation2 + $0x68] sm:$0xff]  ;;  %vm871_vm9 = vcmask 64512   ;;  %s216_s22 = scalar_lea.vmem %s3677_s4, %s3686_s16 }
  0x31   : > { %2593 = vmatpush3.msk.msra.mxu0 %vm248_vm1, %v238_v8  ;;  %2887 = vmatprep.subr.bf16.mxu1 %v3269_v0  ;;  %v2897_v28 = vpack.c.bf16 %v349_v27, %v348_v26  ;;  %v351_v30 = vld [vmem:[#allocation2 + $0x70] sm:$0xff]  ;;  %v352_v32 = vld [vmem:[#allocation2 + $0x78] sm:$0xff]  ;;  %v353_v33 = vld [vmem:[#allocation2 + $0x80] sm:$0xff]  ;;  %s3279_s9 = smov 8   ;;  %vm1440_vm15 = vcmask 195584  }
  0x32   : > { %221 = vrot.lane.b32.xlu0 %v218_v5, %s3272_s11  ;;  %229 = vrot.lane.b32.xlu1 %v219_v6, %s3273_s12  ;;  %v2900_v31 = vpack.c.bf16 %v351_v30, %v350_v29  ;;  %v2903_v34 = vpack.c.bf16 %v353_v33, %v352_v32  ;;  %v354_v35 = vld [vmem:[#allocation2 + $0x88] sm:$0xff]  ;;  %v355_v36 = vld [vmem:[#allocation2 + $0x90] sm:$0xff]  ;;  %v356_v38 = vld [vmem:[#allocation2 + $0x98] sm:$0xff] }
  0x33   : > { %2914 = vmatprep.subr.bf16.mxu0 %v3269_v0  ;;  %v2906_v37 = vpack.c.bf16 %v355_v36, %v354_v35  ;;  %v357_v39 = vld [vmem:[#allocation2 + $0xa0] sm:$0xff]  ;;  %v358_v41 = vld [vmem:[#allocation2 + $0xa8] sm:$0xff]  ;;  %v359_v42 = vld [vmem:[#allocation2 + $0xb0] sm:$0xff] }
  0x34   : > { %2889 = vmatpush1.bf16.msra.mxu1 %v2888_v19  ;;  %v2909_v40 = vpack.c.bf16 %v357_v39, %v356_v38  ;;  %v2912_v43 = vpack.c.bf16 %v359_v42, %v358_v41  ;;  %v2415_v44 = vld [vmem:[%s3675_s2] ss:$0 sm:$0xff]  ;;  %v456_v56 = vld [vmem:[#allocation2 + $0xb8] sm:$0xff]  ;;  %v458_v58 = vld [vmem:[#allocation2 + $0xc8] sm:$0xff] }
  0x35   : > { %2890 = vmatprep.subr.bf16.mxu1 %v3269_v0  ;;  %v457_v57 = vld [vmem:[#allocation2 + $0xc0] sm:$0xff]  ;;  %v459_v60 = vld [vmem:[#allocation2 + $0xd0] sm:$0xff]  ;;  %v460_v62 = vld [vmem:[#allocation2 + $0xd8] sm:$0xff] }
  0x36   : > { %225 = vrot.lane.b32.xlu0 %v217_v2, %s3274_s13  ;;  %v2915_v59 = vpack.c.bf16 %v457_v57, %v456_v56  ;;  %v2918_v61 = vpack.c.bf16 %v459_v60, %v458_v58  ;;  %v461_v63 = vld [vmem:[#allocation2 + $0xe0] sm:$0xff]  ;;  %v462_v3 = vld [vmem:[#allocation2 + $0xe8] sm:$0xff]  ;;  %v463_v4 = vld [vmem:[#allocation2 + $0xf0] sm:$0xff] }
  0x37   : > { %v2921_v2 = vpack.c.bf16 %v461_v63, %v460_v62  ;;  %v2924_v5 = vpack.c.bf16 %v463_v4, %v462_v3  ;;  %v464_v6 = vld [vmem:[#allocation2 + $0xf8] sm:$0xff]  ;;  %v465_v7 = vld [vmem:[#allocation2 + $0x100] sm:$0xff]  ;;  %v470_v15 = vld [vmem:[#allocation2 + $0x128] sm:$0xff] }
  0x38   : > { %2892 = vmatpush1.bf16.msra.mxu1 %v2891_v22  ;;  %v2927_v8 = vpack.c.bf16 %v465_v7, %v464_v6  ;;  %v471_v16 = vld [vmem:[#allocation2 + $0x130] sm:$0xff]  ;;  %v472_v18 = vld [vmem:[#allocation2 + $0x138] sm:$0xff]  ;;  %v473_v19 = vld [vmem:[#allocation2 + $0x140] sm:$0xff] }
  0x39   : > { %2893 = vmatprep.subr.bf16.mxu1 %v3269_v0  ;;  %v2936_v17 = vpack.c.bf16 %v471_v16, %v470_v15  ;;  %v2939_v20 = vpack.c.bf16 %v473_v19, %v472_v18  ;;  %v474_v21 = vld [vmem:[#allocation2 + $0x148] sm:$0xff]  ;;  %v475_v22 = vld [vmem:[#allocation2 + $0x150] sm:$0xff]  ;;  %v476_v24 = vld [vmem:[#allocation2 + $0x158] sm:$0xff] }
  0x3a   : > { %v2942_v23 = vpack.c.bf16 %v475_v22, %v474_v21  ;;  %v478_v27 = vld [vmem:[#allocation2 + $0x168] sm:$0xff]  ;;  %v2418_v30 = vld [vmem:[%s3675_s2 + $0x1] ss:$0 sm:$0xff]  ;;  %v577_v42 = vld [vmem:[#allocation2 + $0x178] sm:$0xff] }
  0x3b   : > { %v587_v57 = vld [vmem:[#allocation2 + $0x1c8] sm:$0xff]  ;;  %v588_v58 = vld [vmem:[#allocation2 + $0x1d0] sm:$0xff]  ;;  %v589_v60 = vld [vmem:[#allocation2 + $0x1d8] sm:$0xff] }
  0x3c   : > { %2895 = vmatpush1.bf16.msra.mxu1 %v2894_v25  ;;  %v477_v25 = vld [vmem:[#allocation2 + $0x160] sm:$0xff]  ;;  %v591_v63 = vld [vmem:[#allocation2 + $0x1e8] sm:$0xff]  ;;  %v681_v18 = vld [vmem:[#allocation2 + $0x1f8] sm:$0xff] }
  0x3d   : > { %2896 = vmatprep.subr.bf16.mxu1 %v3269_v0  ;;  %v2945_v26 = vpack.c.bf16 %v477_v25, %v476_v24  ;;  %v2420_v4 = vld [vmem:[%s3675_s2 + $0x2] ss:$0 sm:$0xff]  ;;  %v684_v22 = vld [vmem:[#allocation2 + $0x210] sm:$0xff]  ;;  %v685_v24 = vld [vmem:[#allocation2 + $0x218] sm:$0xff] }
  0x3e   : > { %v682_v19 = vld [vmem:[#allocation2 + $0x200] sm:$0xff] }
  0x3f   : > { %v2975_v21 = vpack.c.bf16 %v682_v19, %v681_v18  ;;  %v686_v25 = vld [vmem:[#allocation2 + $0x220] sm:$0xff]  ;;  %v960_v19 = vld [vmem:[#allocation2 + $0x2c8] sm:$0xff] }
  0x40   : > { %2898 = vmatpush1.bf16.msra.mxu1 %v2897_v28  ;;  %v479_v28 = vld [vmem:[#allocation2 + $0x170] sm:$0xff]  ;;  %v959_v18 = vld [vmem:[#allocation2 + $0x2c0] sm:$0xff] }
  0x41   : > { %2899 = vmatprep.subr.bf16.mxu1 %v3269_v0  ;;  %v2948_v29 = vpack.c.bf16 %v479_v28, %v478_v27  ;;  %v687_v27 = vld [vmem:[#allocation2 + $0x228] sm:$0xff]  ;;  %v688_v28 = vld [vmem:[#allocation2 + $0x230] sm:$0xff] }
  0x44   : > { %2901 = vmatpush1.bf16.msra.mxu1 %v2900_v31 }
  0x45   : > { %2902 = vmatprep.subr.bf16.mxu1 %v3269_v0 }
  0x48   : > { %2904 = vmatpush1.bf16.msra.mxu1 %v2903_v34 }
  0x49   : > { %2905 = vmatprep.subr.bf16.mxu1 %v3269_v0 }
  0x4c   : > { %2907 = vmatpush1.bf16.msra.mxu1 %v2906_v37 }
  0x4d   : > { %2908 = vmatprep.subr.bf16.mxu1 %v3269_v0 }
  0x50   : > { %2910 = vmatpush1.bf16.msra.mxu1 %v2909_v40 }
  0x51   : > { %2911 = vmatprep.subr.bf16.mxu1 %v3269_v0 }
  0x54   : > { %2913 = vmatpush1.bf16.msra.mxu1 %v2912_v43  ;;  %v578_v43 = vld [vmem:[#allocation2 + $0x180] sm:$0xff] }
  0x55   : > { %2950 = vmatprep.subr.bf16.mxu1 %v3269_v0 }
  0xa4   : > { %v222_v9 = vpop.permute.xlu0 %221  ;;  %v230_v10 = vpop.permute.xlu1 %229 }
  0xa8   : > { %v226_v11 = vpop.permute.xlu0 %225 }
  0xa9   : > { %v233_v12 = vsel %vm232_vm2, %v222_v9, %v226_v11  ;;  %v466_v9 = vld [vmem:[#allocation2 + $0x108] sm:$0xff] }
  0xaa   : > { %v235_v13 = vsel %vm234_vm3, %v233_v12, %v230_v10  ;;  %v467_v10 = vld [vmem:[#allocation2 + $0x110] sm:$0xff]  ;;  %v468_v12 = vld [vmem:[#allocation2 + $0x118] sm:$0xff] }
  0xab   : > { %2595 = vmatmul.mubr.msk.f32.vlgmr.msra.gmra.mrb[0].mxu0 %vm244_vm4, %v235_v13  ;;  %v2930_v11 = vpack.c.bf16 %v467_v10, %v466_v9  ;;  %v469_v13 = vld [vmem:[#allocation2 + $0x120] sm:$0xff] }
  0xac   : > { %2916 = vmatpush1.bf16.msra.mxu0 %v2915_v59  ;;  %v2933_v14 = vpack.c.bf16 %v469_v13, %v468_v12  ;;  %v2966_v59 = vpack.c.bf16 %v588_v58, %v587_v57  ;;  %v791_v57 = vld [vmem:[#allocation2 + $0x290] sm:$0xff] }
  0xad   : > { %2917 = vmatprep.subr.bf16.mxu0 %v3269_v0 }
  0xb0   : > { %2919 = vmatpush1.bf16.msra.mxu0 %v2918_v61  ;;  %v590_v61 = vld [vmem:[#allocation2 + $0x1e0] sm:$0xff] }
  0xb1   : > { %2920 = vmatprep.subr.bf16.mxu0 %v3269_v0  ;;  %v2969_v62 = vpack.c.bf16 %v590_v61, %v589_v60  ;;  %v793_v60 = vld [vmem:[#allocation2 + $0x2a0] sm:$0xff] }
  0xb4   : > { %2922 = vmatpush1.bf16.msra.mxu0 %v2921_v2  ;;  %v592_v2 = vld [vmem:[#allocation2 + $0x1f0] sm:$0xff] }
  0xb5   : > { %2923 = vmatprep.subr.bf16.mxu0 %v3269_v0  ;;  %v2972_v3 = vpack.c.bf16 %v592_v2, %v591_v63  ;;  %v795_v63 = vld [vmem:[#allocation2 + $0x2b0] sm:$0xff] }
  0xb8   : > { %2925 = vmatpush1.bf16.msra.mxu0 %v2924_v5 }
  0xb9   : > { %2926 = vmatprep.subr.bf16.mxu0 %v3269_v0 }
  0xbc   : > { %2928 = vmatpush1.bf16.msra.mxu0 %v2927_v8 }
  0xbd   : > { %2929 = vmatprep.subr.bf16.mxu0 %v3269_v0 }
  0xc0   : > { %2931 = vmatpush1.bf16.msra.mxu0 %v2930_v11 }
  0xc1   : > { %2932 = vmatprep.subr.bf16.mxu0 %v3269_v0 }
  0xc4   : > { %2934 = vmatpush1.bf16.msra.mxu0 %v2933_v14 }
  0xc5   : > { %2935 = vmatprep.subr.bf16.mxu0 %v3269_v0 }
  0xc8   : > { %2937 = vmatpush1.bf16.msra.mxu0 %v2936_v17 }
  0xc9   : > { %2938 = vmatprep.subr.bf16.mxu0 %v3269_v0 }
  0xcc   : > { %2940 = vmatpush1.bf16.msra.mxu0 %v2939_v20  ;;  %v683_v20 = vld [vmem:[#allocation2 + $0x208] sm:$0xff] }
  0xcd   : > { %2941 = vmatprep.subr.bf16.mxu0 %v3269_v0 }
  0xd0   : > { %2943 = vmatpush1.bf16.msra.mxu0 %v2942_v23  ;;  %v2978_v23 = vpack.c.bf16 %v684_v22, %v683_v20  ;;  %v961_v20 = vld [vmem:[#allocation2 + $0x2d0] sm:$0xff]  ;;  %v962_v22 = vld [vmem:[#allocation2 + $0x2d8] sm:$0xff] }
  0xd1   : > { %2944 = vmatprep.subr.bf16.mxu0 %v3269_v0 }
  0xd4   : > { %2946 = vmatpush1.bf16.msra.mxu0 %v2945_v26  ;;  %v2981_v26 = vpack.c.bf16 %v686_v25, %v685_v24  ;;  %v963_v24 = vld [vmem:[#allocation2 + $0x2e0] sm:$0xff]  ;;  %v964_v25 = vld [vmem:[#allocation2 + $0x2e8] sm:$0xff] }
  0xd5   : > { %2947 = vmatprep.subr.bf16.mxu0 %v3269_v0 }
  0xd8   : > { %2949 = vmatpush1.bf16.msra.mxu0 %v2948_v29  ;;  %v2984_v29 = vpack.c.bf16 %v688_v28, %v687_v27  ;;  %v965_v27 = vld [vmem:[#allocation2 + $0x2f0] sm:$0xff]  ;;  %v966_v28 = vld [vmem:[#allocation2 + $0x2f8] sm:$0xff] }
  0xd9   : > { %2974 = vmatprep.subr.bf16.mxu0 %v3269_v0 }
 0x17e   : > { %v318_v45 = vpop.f32.mrb[0].mxu0 }
 0x17f   : > { %v319_v46 = vadd.f32 %v2415_v44, %v318_v45  ;;  %v2596_v47 = vpop.f32.mrb[1].mxu0  ;;  %v579_v44 = vld [vmem:[#allocation2 + $0x188] sm:$0xff]  ;;  %v2951_v45 = vpack.c.bf16 %v578_v43, %v577_v42 }
 0x181   : > { %v322_v48 = vmax.f32 %v319_v46, 0.0  ;;  %v580_v46 = vld [vmem:[#allocation2 + $0x190] sm:$0xff] }
 0x182   : > { %v2954_v47 = vpack.c.bf16 %v580_v46, %v579_v44 }
 0x183   : > { %330 = vrot.lane.b32.xlu1 %v322_v48, %s3275_s18  ;;  %v324_v49 = vrot.slane %v322_v48, 1  ;;  %v323_v50 = vrot.slane %v322_v48, 7  ;;  %v581_v48 = vld [vmem:[#allocation2 + $0x198] sm:$0xff] }
 0x185   : > { %334 = vrot.lane.b32.xlu0 %v324_v49, %s3275_s18  ;;  %v582_v49 = vld [vmem:[#allocation2 + $0x1a0] sm:$0xff] }
 0x187   : > { %326 = vrot.lane.b32.xlu1 %v323_v50, %s3275_s18  ;;  %v2957_v50 = vpack.c.bf16 %v582_v49, %v581_v48  ;;  %v785_v48 = vld [vmem:[#allocation2 + $0x260] sm:$0xff]  ;;  %v786_v49 = vld [vmem:[#allocation2 + $0x268] sm:$0xff] }
 0x1f5   : > { %v331_v51 = vpop.permute.xlu1 %330 }
 0x1f7   : > { %v335_v52 = vpop.permute.xlu0 %334 }
 0x1f8   : > { %v339_v53 = vsel %vm337_vm5, %v331_v51, %v335_v52  ;;  %v584_v52 = vld [vmem:[#allocation2 + $0x1b0] sm:$0xff] }
 0x1f9   : > { %2419 = vmatprep.mubr.msk.f32.mxu1 %vm365_vm6, %v339_v53  ;;  %v327_v54 = vpop.permute.xlu1 %326 }
 0x1fa   : > { %v338_v55 = vsel %vm337_vm5, %v327_v54, %v331_v51  ;;  %v583_v51 = vld [vmem:[#allocation2 + $0x1a8] sm:$0xff]  ;;  %v585_v54 = vld [vmem:[#allocation2 + $0x1b8] sm:$0xff] }
 0x1fb   : > { %434 = vmatmul.mubr.f32.vlgmr.msra.gmra.mrb[0].mxu1 %v338_v55  ;;  %v2960_v53 = vpack.c.bf16 %v584_v52, %v583_v51  ;;  %v586_v55 = vld [vmem:[#allocation2 + $0x1c0] sm:$0xff]  ;;  %v787_v51 = vld [vmem:[#allocation2 + $0x270] sm:$0xff] }
 0x1fc   : > { %2629 = vmatprep.mubr.msk.f32.mxu1 %vm3270_vm0, %v3271_v1  ;;  %2952 = vmatpush3.bf16.msra.mxu1 %v2951_v45  ;;  %v2963_v56 = vpack.c.bf16 %v586_v55, %v585_v54  ;;  %v2996_v52 = vpack.c.bf16 %v787_v51, %v786_v49  ;;  %v789_v54 = vld [vmem:[#allocation2 + $0x280] sm:$0xff] }
 0x1fd   : > { %2953 = vmatprep.subr.bf16.mxu1 %v3269_v0 }
 0x200   : > { %2955 = vmatpush3.bf16.msra.mxu1 %v2954_v47  ;;  %v784_v47 = vld [vmem:[#allocation2 + $0x258] sm:$0xff] }
 0x201   : > { %2956 = vmatprep.subr.bf16.mxu1 %v3269_v0 }
 0x204   : > { %2958 = vmatpush3.bf16.msra.mxu1 %v2957_v50  ;;  %v2993_v50 = vpack.c.bf16 %v785_v48, %v784_v47  ;;  %v1121_v47 = vld [vmem:[#allocation2 + $0x328] sm:$0xff]  ;;  %v1122_v48 = vld [vmem:[#allocation2 + $0x330] sm:$0xff] }
 0x205   : > { %2959 = vmatprep.subr.bf16.mxu1 %v3269_v0 }
 0x208   : > { %2961 = vmatpush3.bf16.msra.mxu1 %v2960_v53  ;;  %v788_v53 = vld [vmem:[#allocation2 + $0x278] sm:$0xff] }
 0x209   : > { %2962 = vmatprep.subr.bf16.mxu1 %v3269_v0  ;;  %v2999_v55 = vpack.c.bf16 %v789_v54, %v788_v53  ;;  %v1123_v53 = vld [vmem:[#allocation2 + $0x338] sm:$0xff]  ;;  %v1124_v54 = vld [vmem:[#allocation2 + $0x340] sm:$0xff] }
 0x20c   : > { %2964 = vmatpush3.bf16.msra.mxu1 %v2963_v56  ;;  %v790_v56 = vld [vmem:[#allocation2 + $0x288] sm:$0xff] }
 0x20d   : > { %2965 = vmatprep.subr.bf16.mxu1 %v3269_v0  ;;  %v3002_v58 = vpack.c.bf16 %v791_v57, %v790_v56  ;;  %v1213_v56 = vld [vmem:[#allocation2 + $0x348] sm:$0xff] }
 0x210   : > { %2967 = vmatpush3.bf16.msra.mxu1 %v2966_v59  ;;  %v792_v59 = vld [vmem:[#allocation2 + $0x298] sm:$0xff] }
 0x211   : > { %2968 = vmatprep.subr.bf16.mxu1 %v3269_v0  ;;  %v3005_v61 = vpack.c.bf16 %v793_v60, %v792_v59 }
 0x214   : > { %2970 = vmatpush3.bf16.msra.mxu1 %v2969_v62  ;;  %v794_v62 = vld [vmem:[#allocation2 + $0x2a8] sm:$0xff] }
 0x215   : > { %2971 = vmatprep.subr.bf16.mxu1 %v3269_v0  ;;  %v3008_v2 = vpack.c.bf16 %v795_v63, %v794_v62 }
 0x218   : > { %2973 = vmatpush3.bf16.msra.mxu1 %v2972_v3  ;;  %v870_v3 = vld [vmem:[#allocation2 + $0x2b8] sm:$0xff] }
 0x219   : > { %2992 = vmatprep.subr.bf16.mxu1 %v3269_v0 }
 0x2ce   : > { %v435_v31 = vpop.f32.mrb[0].mxu1 }
 0x2cf   : > { %v436_v32 = vadd.f32 %v2418_v30, %v435_v31  ;;  %v437_v33 = vpop.f32.mrb[1].mxu1  ;;  %v689_v30 = vld [vmem:[#allocation2 + $0x238] sm:$0xff]  ;;  %v690_v31 = vld [vmem:[#allocation2 + $0x240] sm:$0xff] }
 0x2d0   : > { %v691_v33 = vld [vmem:[#allocation2 + $0x248] sm:$0xff] }
 0x2d1   : > { %v439_v34 = vmax.f32 %v436_v32, 0.0  ;;  %v2987_v32 = vpack.c.bf16 %v690_v31, %v689_v30  ;;  %v967_v30 = vld [vmem:[#allocation2 + $0x300] sm:$0xff]  ;;  %v968_v31 = vld [vmem:[#allocation2 + $0x308] sm:$0xff] }
 0x2d3   : > { %447 = vrot.lane.b32.xlu0 %v439_v34, %s3276_s21  ;;  %v441_v35 = vrot.slane %v439_v34, 1  ;;  %v440_v36 = vrot.slane %v439_v34, 7  ;;  %v692_v34 = vld [vmem:[#allocation2 + $0x250] sm:$0xff] }
 0x2d5   : > { %451 = vrot.lane.b32.xlu1 %v441_v35, %s3276_s21  ;;  %v2990_v35 = vpack.c.bf16 %v692_v34, %v691_v33  ;;  %v969_v33 = vld [vmem:[#allocation2 + $0x310] sm:$0xff]  ;;  %v970_v34 = vld [vmem:[#allocation2 + $0x318] sm:$0xff] }
 0x2d7   : > { %443 = vrot.lane.b32.xlu0 %v440_v36, %s3276_s21  ;;  %v2422_v36 = vld [vmem:[%s3675_s2 + $0x3] ss:$0 sm:$0xff] }
 0x345   : > { %v448_v37 = vpop.permute.xlu0 %447 }
 0x347   : > { %v452_v38 = vpop.permute.xlu1 %451 }
 0x348   : > { %v455_v39 = vsel %vm365_vm6, %v448_v37, %v452_v38 }
 0x349   : > { %2421 = vmatprep.mubr.msk.f32.mxu0 %vm485_vm7, %v455_v39  ;;  %v444_v40 = vpop.permute.xlu0 %443 }
 0x34a   : > { %v454_v41 = vsel %vm365_vm6, %v444_v40, %v448_v37 }
 0x34b   : > { %554 = vmatmul.mubr.f32.vlgmr.msra.gmra.mrb[2].mxu0 %v454_v41 }
 0x34c   : > { %2656 = vmatprep.mubr.msk.f32.mxu0 %vm3270_vm0, %v3271_v1  ;;  %2976 = vmatpush3.bf16.msra.mxu0 %v2975_v21  ;;  %v3011_v21 = vpack.c.bf16 %v960_v19, %v959_v18 }
 0x34d   : > { %2977 = vmatprep.subr.bf16.mxu0 %v3269_v0 }
 0x350   : > { %2979 = vmatpush3.bf16.msra.mxu0 %v2978_v23  ;;  %v3014_v23 = vpack.c.bf16 %v962_v22, %v961_v20 }
 0x351   : > { %2980 = vmatprep.subr.bf16.mxu0 %v3269_v0 }
 0x354   : > { %2982 = vmatpush3.bf16.msra.mxu0 %v2981_v26  ;;  %v3017_v26 = vpack.c.bf16 %v964_v25, %v963_v24  ;;  %v1314_v24 = vld [vmem:[#allocation2 + $0x350] sm:$0xff]  ;;  %v1315_v25 = vld [vmem:[#allocation2 + $0x358] sm:$0xff] }
 0x355   : > { %2983 = vmatprep.subr.bf16.mxu0 %v3269_v0 }
 0x358   : > { %2985 = vmatpush3.bf16.msra.mxu0 %v2984_v29  ;;  %v3020_v29 = vpack.c.bf16 %v966_v28, %v965_v27 }
 0x359   : > { %2986 = vmatprep.subr.bf16.mxu0 %v3269_v0 }
 0x35c   : > { %2988 = vmatpush3.bf16.msra.mxu0 %v2987_v32  ;;  %v3023_v32 = vpack.c.bf16 %v968_v31, %v967_v30 }
 0x35d   : > { %2989 = vmatprep.subr.bf16.mxu0 %v3269_v0 }
 0x360   : > { %2991 = vmatpush3.bf16.msra.mxu0 %v2990_v35  ;;  %v3026_v35 = vpack.c.bf16 %v970_v34, %v969_v33  ;;  %v1432_v33 = vld [vmem:[#allocation2 + $0x360] sm:$0xff]  ;;  %v1433_v34 = vld [vmem:[#allocation2 + $0x368] sm:$0xff] }
 0x361   : > { %2686 = vmatprep.subr.mxu0 %v3271_v1 }
 0x41e   : > { %v555_v5 = vpop.f32.mrb[2].mxu0 }
 0x41f   : > { %v556_v6 = vadd.f32 %v2420_v4, %v555_v5  ;;  %v557_v7 = vpop.f32.mrb[3].mxu0  ;;  %v2423_v4 = vld [vmem:[%s3675_s2 + $0x4] ss:$0 sm:$0xff] }
 0x421   : > { %v559_v8 = vmax.f32 %v556_v6, 0.0 }
 0x423   : > { %v560_v9 = vrot.slane %v559_v8, 7  ;;  %v561_v10 = vrot.slane %v559_v8, 1  ;;  %567 = vrot.lane.b32.xlu0 %v559_v8, %s3276_s21 }
 0x425   : > { %v3216_v11 = vpack.i.bf16 %v561_v10, %v560_v9 }
 0x427   : > { %3217 = vrot.lane.b32.xlu1 %v3216_v11, %s3277_s24 }
 0x495   : > { %v568_v15 = vpop.permute.xlu0 %567 }
 0x499   : > { %v3218_v12 = vpop.permute.xlu1 %3217 }
 0x49a   : > { %v3220_v13 = vunpack.i.h.bf16 %v3218_v12  ;;  %v3219_v14 = vunpack.i.l.bf16 %v3218_v12 }
 0x49c   : > { %v574_v16 = vsel %vm365_vm6, %v3219_v14, %v568_v15 }
 0x49d   : > { %v576_v17 = vsel %vm575_vm8, %v574_v16, %v3220_v13 }
 0x49e   : > { %2630 = vmatmul.mubr.f32.vlgmr.msra.gmra.mrb[2].mxu1 %v576_v17 }
 0x49f   : > { %2683 = vmatprep.mubr.msk.f32.mxu1 %vm3270_vm0, %v3271_v1  ;;  %2994 = vmatpush3.bf16.msra.mxu1 %v2993_v50  ;;  %v3029_v50 = vpack.c.bf16 %v1122_v48, %v1121_v47  ;;  %v1527_v48 = vld [vmem:[#allocation2 + $0x378] sm:$0xff] }
 0x4a0   : > { %2995 = vmatprep.subr.bf16.mxu1 %v3269_v0 }
 0x4a3   : > { %2997 = vmatpush3.bf16.msra.mxu1 %v2996_v52 }
 0x4a4   : > { %2998 = vmatprep.subr.bf16.mxu1 %v3269_v0 }
 0x4a7   : > { %3000 = vmatpush3.bf16.msra.mxu1 %v2999_v55  ;;  %v3032_v55 = vpack.c.bf16 %v1124_v54, %v1123_v53  ;;  %v1531_v54 = vld [vmem:[#allocation2 + $0x398] sm:$0xff] }
 0x4a8   : > { %3001 = vmatprep.subr.bf16.mxu1 %v3269_v0 }
 0x4ab   : > { %3003 = vmatpush3.bf16.msra.mxu1 %v3002_v58 }
 0x4ac   : > { %3004 = vmatprep.subr.bf16.mxu1 %v3269_v0 }
 0x4af   : > { %3006 = vmatpush3.bf16.msra.mxu1 %v3005_v61  ;;  %v2429_v61 = vld [vmem:[%s3675_s2 + $0x5] ss:$0 sm:$0xff] }
 0x4b0   : > { %3007 = vmatprep.subr.bf16.mxu1 %v3269_v0 }
 0x4b3   : > { %3009 = vmatpush3.bf16.msra.mxu1 %v3008_v2 }
 0x4b4   : > { %2718 = vmatprep.subr.mxu1 %v3271_v1 }
 0x571   : > { %v664_v37 = vpop.f32.mrb[2].mxu1 }
 0x572   : > { %v665_v38 = vadd.f32 %v2422_v36, %v664_v37  ;;  %v2631_v39 = vpop.f32.mrb[3].mxu1  ;;  %v1045_v36 = vld [vmem:[#allocation2 + $0x320] sm:$0xff] }
 0x574   : > { %v668_v40 = vmax.f32 %v665_v38, 0.0 }
 0x576   : > { %672 = vrot.lane.b32.xlu1 %v668_v40, %s3276_s21  ;;  %v670_v41 = vrot.slane %v668_v40, 1  ;;  %v669_v42 = vrot.slane %v668_v40, 7 }
 0x578   : > { %676 = vrot.lane.b32.xlu0 %v670_v41, %s3278_s27 }
 0x5e8   : > { %v673_v43 = vpop.permute.xlu1 %672 }
 0x5e9   : > { %v679_v44 = vsel %vm365_vm6, %v669_v42, %v673_v43 }
 0x5ea   : > { %v677_v45 = vpop.permute.xlu0 %676 }
 0x5eb   : > { %v680_v46 = vsel %vm485_vm7, %v679_v44, %v677_v45 }
 0x5ec   : > { %2657 = vmatmul.mubr.msk.f32.vlgmr.msra.gmra.mrb[4].mxu0 %vm575_vm8, %v680_v46 }
 0x5ed   : > { %2688 = vmatprep.mubr.msk.f32.mxu0 %vm3270_vm0, %v3271_v1  ;;  %2687 = vmatpush3.msra.mxu0 %v870_v3 }
 0x5ee   : > { %3010 = vmatprep.subr.bf16.mxu0 %v3269_v0 }
 0x6bf   : > { %v767_v5 = vpop.f32.mrb[4].mxu0 }
 0x6c0   : > { %v768_v6 = vadd.f32 %v2423_v4, %v767_v5  ;;  %v2658_v7 = vpop.f32.mrb[5].mxu0  ;;  %v2431_v5 = vld [vmem:[%s3675_s2 + $0x6] ss:$0 sm:$0xff] }
 0x6c2   : > { %v771_v8 = vmax.f32 %v768_v6, 0.0 }
 0x6c4   : > { %775 = vrot.lane.b32.xlu1 %v771_v8, %s3276_s21  ;;  %v773_v9 = vrot.slane %v771_v8, 1  ;;  %v772_v10 = vrot.slane %v771_v8, 7 }
 0x6c6   : > { %779 = vrot.lane.b32.xlu0 %v773_v9, %s3278_s27 }
 0x736   : > { %v776_v11 = vpop.permute.xlu1 %775 }
 0x737   : > { %v782_v12 = vsel %vm365_vm6, %v772_v10, %v776_v11 }
 0x738   : > { %v780_v13 = vpop.permute.xlu0 %779 }
 0x739   : > { %v783_v14 = vsel %vm485_vm7, %v782_v12, %v780_v13  ;;  %v1289_v13 = vlaneseq }
 0x73a   : > { %2684 = vmatmul.mubr.msk.f32.vlgmr.msra.gmra.mrb[4].mxu1 %vm575_vm8, %v783_v14 }
 0x73b   : > { %2720 = vmatprep.mubr.msk.f32.mxu1 %vm3270_vm0, %v3271_v1  ;;  %2719 = vmatpush3.msra.mxu1 %v1045_v36  ;;  %v1290_v14 = vand.u32 127, %v1289_v13  ;;  %v1434_v36 = vld [vmem:[#allocation2 + $0x370] sm:$0xff] }
 0x73c   : > { %3028 = vmatprep.subr.bf16.mxu1 %v3269_v0 }
 0x80d   : > { %v865_v15 = vpop.f32.mrb[4].mxu1 }
 0x80e   : > { %v869_v16 = vmax.f32 %v865_v15, 0.0  ;;  %v2685_v17 = vpop.f32.mrb[5].mxu1 }
 0x810   : > { %2689 = vmatmul.mubr.msk.f32.vlgmr.msra.gmra.mrb[6].mxu0 %vm871_vm9, %v869_v16 }
 0x811   : > { %2715 = vmatprep.mubr.msk.f32.mxu0 %vm3270_vm0, %v3271_v1  ;;  %3012 = vmatpush3.bf16.msra.mxu0 %v3011_v21 }
 0x812   : > { %3013 = vmatprep.subr.bf16.mxu0 %v3269_v0 }
 0x815   : > { %3015 = vmatpush3.bf16.msra.mxu0 %v3014_v23 }
 0x816   : > { %3016 = vmatprep.subr.bf16.mxu0 %v3269_v0 }
 0x819   : > { %3018 = vmatpush3.bf16.msra.mxu0 %v3017_v26  ;;  %v3035_v26 = vpack.c.bf16 %v1315_v25, %v1314_v24  ;;  %v1704_v24 = vld [vmem:[#allocation2 + $0x3f8] sm:$0xff] }
 0x81a   : > { %3019 = vmatprep.subr.bf16.mxu0 %v3269_v0 }
 0x81d   : > { %3021 = vmatpush3.bf16.msra.mxu0 %v3020_v29 }
 0x81e   : > { %3022 = vmatprep.subr.bf16.mxu0 %v3269_v0 }
 0x821   : > { %3024 = vmatpush3.bf16.msra.mxu0 %v3023_v32 }
 0x822   : > { %3025 = vmatprep.subr.bf16.mxu0 %v3269_v0 }
 0x825   : > { %3027 = vmatpush3.bf16.msra.mxu0 %v3026_v35  ;;  %v3038_v35 = vpack.c.bf16 %v1433_v34, %v1432_v33  ;;  %v1709_v33 = vld [vmem:[#allocation2 + $0x420] sm:$0xff]  ;;  %v1710_v34 = vld [vmem:[#allocation2 + $0x428] sm:$0xff] }
 0x826   : > { %2734 = vmatprep.subr.mxu0 %v3271_v1 }
 0x8e3   : > { %v941_v37 = vpop.f32.mrb[6].mxu0 }
 0x8e4   : > { %v945_v38 = vadd.f32 %v941_v37, %v768_v6  ;;  %v2690_v39 = vpop.f32.mrb[7].mxu0  ;;  %v3515_v37 = vshrl.u32 %v1289_v13, 7 }
 0x8e6   : > { %v946_v40 = vmax.f32 %v945_v38, 0.0  ;;  %vm1420_vm13 = vcmp.eq.s32.totalorder %v3515_v37, 7  ;;  %vm1418_vm14 = vcmp.eq.s32.totalorder %v3515_v37, 0 }
 0x8e8   : > { %950 = vrot.lane.b32.xlu1 %v946_v40, %s3276_s21  ;;  %v948_v41 = vrot.slane %v946_v40, 1  ;;  %v947_v42 = vrot.slane %v946_v40, 7 }
 0x8ea   : > { %954 = vrot.lane.b32.xlu0 %v948_v41, %s3278_s27 }
 0x95a   : > { %v951_v43 = vpop.permute.xlu1 %950 }
 0x95b   : > { %v957_v44 = vsel %vm365_vm6, %v947_v42, %v951_v43 }
 0x95c   : > { %v955_v45 = vpop.permute.xlu0 %954 }
 0x95d   : > { %v958_v46 = vsel %vm485_vm7, %v957_v44, %v955_v45 }
 0x95e   : > { %2716 = vmatmul.mubr.msk.f32.vlgmr.msra.gmra.mrb[8].mxu0 %vm575_vm8, %v958_v46 }
 0x95f   : > { %2736 = vmatprep.mubr.msk.f32.mxu0 %vm3270_vm0, %v3271_v1  ;;  %2735 = vmatpush3.msra.mxu0 %v1213_v56 }
 0x960   : > { %3037 = vmatprep.subr.bf16.mxu0 %v3269_v0 }
 0xa31   : > { %v1040_v49 = vpop.f32.mrb[8].mxu0 }
 0xa32   : > { %v1044_v51 = vmax.f32 %v1040_v49, 0.0  ;;  %v2717_v52 = vpop.f32.mrb[9].mxu0  ;;  %v1528_v49 = vld [vmem:[#allocation2 + $0x380] sm:$0xff] }
 0xa33   : > { %v1530_v52 = vld [vmem:[#allocation2 + $0x390] sm:$0xff] }
 0xa34   : > { %2721 = vmatmul.mubr.msk.f32.vlgmr.msra.gmra.mrb[6].mxu1 %vm871_vm9, %v1044_v51  ;;  %v3041_v51 = vpack.c.bf16 %v1528_v49, %v1527_v48 }
 0xa35   : > { %3030 = vmatpush3.bf16.msra.mxu1 %v3029_v50  ;;  %2731 = vmatprep.mubr.msk.f32.mxu1 %vm3270_vm0, %v3271_v1  ;;  %v1529_v50 = vld [vmem:[#allocation2 + $0x388] sm:$0xff] }
 0xa36   : > { %3031 = vmatprep.subr.bf16.mxu1 %v3269_v0  ;;  %v3044_v53 = vpack.c.bf16 %v1530_v52, %v1529_v50 }
 0xa39   : > { %3033 = vmatpush3.bf16.msra.mxu1 %v3032_v55  ;;  %v1532_v55 = vld [vmem:[#allocation2 + $0x3a0] sm:$0xff] }
 0xa3a   : > { %3034 = vmatprep.subr.bf16.mxu1 %v3269_v0  ;;  %v3047_v56 = vpack.c.bf16 %v1532_v55, %v1531_v54  ;;  %v1877_v55 = vld [vmem:[#allocation2 + $0x448] sm:$0xff] }
 0xb07   : > { %v1115_v57 = vpop.f32.mrb[6].mxu1 }
 0xb08   : > { %v1119_v58 = vadd.f32 %v1115_v57, %v945_v38  ;;  %v2722_v59 = vpop.f32.mrb[7].mxu1  ;;  %v1533_v57 = vld [vmem:[#allocation2 + $0x3a8] sm:$0xff] }
 0xb0a   : > { %v1120_v60 = vmax.f32 %v1119_v58, 0.0  ;;  %v1534_v58 = vld [vmem:[#allocation2 + $0x3b0] sm:$0xff] }
 0xb0b   : > { %v3050_v59 = vpack.c.bf16 %v1534_v58, %v1533_v57  ;;  %v1879_v57 = vld [vmem:[#allocation2 + $0x458] sm:$0xff] }
 0xb0c   : > { %2732 = vmatmul.mubr.msk.f32.vlgmr.msra.gmra.mrb[8].mxu1 %vm365_vm6, %v1120_v60  ;;  %v1535_v60 = vld [vmem:[#allocation2 + $0x3b8] sm:$0xff] }
 0xb0d   : > { %2743 = vmatprep.mubr.msk.f32.mxu1 %vm3270_vm0, %v3271_v1  ;;  %3036 = vmatpush3.bf16.msra.mxu1 %v3035_v26  ;;  %v1705_v26 = vld [vmem:[#allocation2 + $0x400] sm:$0xff] }
 0xb0e   : > { %3040 = vmatprep.subr.bf16.mxu1 %v3269_v0 }
 0xbdf   : > { %v1199_v62 = vpop.f32.mrb[8].mxu1 }
 0xbe0   : > { %v3491_v63 = vadd.f32 %v2429_v61, %v1199_v62  ;;  %v2733_v2 = vpop.f32.mrb[9].mxu1  ;;  %v1536_v61 = vld [vmem:[#allocation2 + $0x3c0] sm:$0xff] }
 0xbe1   : > { %v3053_v62 = vpack.c.bf16 %v1536_v61, %v1535_v60  ;;  %v1537_v2 = vld [vmem:[#allocation2 + $0x3c8] sm:$0xff] }
 0xbe2   : > { %2737 = vmatmul.mubr.msk.f32.vlgmr.msra.gmra.mrb[10].mxu0 %vm871_vm9, %v3491_v63  ;;  %v1203_v3 = vmul.f32 %v3491_v63, %v3491_v63  ;;  %v1881_v61 = vld [vmem:[#allocation2 + $0x468] sm:$0xff] }
 0xbe3   : > { %2752 = vmatprep.mubr.msk.f32.mxu0 %vm3270_vm0, %v3271_v1  ;;  %3039 = vmatpush3.bf16.msra.mxu0 %v3038_v35  ;;  %v3071_v35 = vpack.c.bf16 %v1710_v34, %v1709_v33  ;;  %v1992_v33 = vld [vmem:[#allocation2 + $0x4d8] sm:$0xff]  ;;  %v1993_v34 = vld [vmem:[#allocation2 + $0x4e0] sm:$0xff] }
 0xbe4   : > { %v1204_v4 = vsel %vm871_vm9, %v1203_v3, 0.0  ;;  %2750 = vmatprep.subr.mxu0 %v3271_v1  ;;  %v1538_v3 = vld [vmem:[#allocation2 + $0x3d0] sm:$0xff] }
 0xbe5   : > { %1205 = vadd.xlane.f32.xlu1 %v1204_v4  ;;  %v3056_v4 = vpack.c.bf16 %v1538_v3, %v1537_v2  ;;  %v1883_v3 = vld [vmem:[#allocation2 + $0x478] sm:$0xff] }
 0xbe7   : > { %2751 = vmatpush3.msra.mxu0 %v1434_v36  ;;  %v1711_v36 = vld [vmem:[#allocation2 + $0x430] sm:$0xff] }
 0xbe8   : > { %2782 = vmatprep.subr.mxu0 %v3271_v1 }
 0xc72   : > { %v1206_v6 = vpop.xlane.xlu1 %1205 }
 0xc73   : > { %v1212_v8 = vadd.f32 %v2431_v5, %v1206_v6  ;;  %v1613_v5 = vld [vmem:[#allocation2 + $0x3d8] sm:$0xff]  ;;  %v2435_v6 = vld [vmem:[%s3675_s2 + $0x7] ss:$0 sm:$0xff] }
 0xcb5   : > { %v1283_v7 = vpop.f32.mrb[10].mxu0 }
 0xcb6   : > { %v1287_v9 = vmul.f32 2.0, %v1283_v7  ;;  %v2738_v10 = vpop.f32.mrb[11].mxu0 }
 0xcb8   : > { %v1288_v11 = vsub.f32 %v1212_v8, %v1287_v9 }
 0xcba   : > { %v1291_v12 = vsel %vm337_vm5, %v1288_v11, inf }
 0xcbb   : > { %1292 = vmin.xlane.f32.xlu0 %v1291_v12 }
 0xd48   : > { %v1293_v15 = vpop.xlane.xlu0 %1292 }
 0xd49   : > { %vm1294_vm10 = vcmp.le.f32.partialorder %v1288_v11, %v1293_v15 }
 0xd4a   : > { %v1295_v16 = vsel %vm1294_vm10, %v1290_v14, 16 }
 0xd4b   : > { %v1296_v17 = vsel %vm337_vm5, %v1295_v16, 2147483647 }
 0xd4c   : > { %v1298_v18 = vshra.s32 %v1296_v17, 16  ;;  %v1297_v20 = vand.u32 65535, %v1296_v17 }
 0xd4e   : > { %v1300_v19 = vcvt.s32.f32 %v1298_v18  ;;  %v1299_v22 = vcvt.s32.f32 %v1297_v20  ;;  %v1701_v20 = vld [vmem:[#allocation2 + $0x3e0] sm:$0xff] }
 0xd50   : > { %1301 = vmin.xlane.f32.xlu0 %v1300_v19 }
 0xddd   : > { %v1302_v21 = vpop.xlane.xlu0 %1301 }
 0xdde   : > { %vm1303_vm11 = vcmp.eq.f32.partialorder %v1300_v19, %v1302_v21  ;;  %v1308_v27 = vcvt.f32.s32 %v1302_v21  ;;  %v1702_v21 = vld [vmem:[#allocation2 + $0x3e8] sm:$0xff] }
 0xddf   : > { %v1304_v23 = vsel %vm1303_vm11, %v1299_v22, inf  ;;  %v1703_v22 = vld [vmem:[#allocation2 + $0x3f0] sm:$0xff] }
 0xde0   : > { %1305 = vmin.xlane.f32.xlu1 %v1304_v23  ;;  %v1309_v29 = vshll.u32 %v1308_v27, 16  ;;  %v3059_v23 = vpack.c.bf16 %v1702_v21, %v1701_v20  ;;  %v3062_v25 = vpack.c.bf16 %v1704_v24, %v1703_v22  ;;  %v1706_v27 = vld [vmem:[#allocation2 + $0x408] sm:$0xff]  ;;  %v1987_v24 = vld [vmem:[#allocation2 + $0x4b0] sm:$0xff] }
 0xe6d   : > { %v1306_v28 = vpop.xlane.xlu1 %1305 }
 0xe6e   : > { %v1307_v30 = vcvt.f32.s32 %v1306_v28  ;;  %v3065_v28 = vpack.c.bf16 %v1706_v27, %v1705_v26  ;;  %v1989_v27 = vld [vmem:[#allocation2 + $0x4c0] sm:$0xff] }
 0xe70   : > { %v1310_v31 = vadd.s32 %v1309_v29, %v1307_v30  ;;  %v1707_v29 = vld [vmem:[#allocation2 + $0x410] sm:$0xff]  ;;  %v1708_v30 = vld [vmem:[#allocation2 + $0x418] sm:$0xff] }
 0xe72   : > { %vm1311_vm12 = vcmp.eq.s32.totalorder %v1290_v14, %v1310_v31  ;;  %v3068_v31 = vpack.c.bf16 %v1708_v30, %v1707_v29  ;;  %v1990_v29 = vld [vmem:[#allocation2 + $0x4c8] sm:$0xff]  ;;  %v1991_v30 = vld [vmem:[#allocation2 + $0x4d0] sm:$0xff] }
 0xe73   : > { %v3507_v32 = vsel %vm1311_vm12, 1.0, %v3271_v1 }
 0xe74   : > { %2744 = vmatmul.mubr.msk.f32.vlgmr.msra.gmra.mrb[10].mxu1 %vm337_vm5, %v3507_v32 }
 0xe75   : > { %2779 = vmatprep.mubr.msk.f32.mxu1 %vm3270_vm0, %v3271_v1  ;;  %3042 = vmatpush3.bf16.msra.mxu1 %v3041_v51 }
 0xe76   : > { %3043 = vmatprep.subr.bf16.mxu1 %v3269_v0 }
 0xe79   : > { %3045 = vmatpush3.bf16.msra.mxu1 %v3044_v53 }
 0xe7a   : > { %3046 = vmatprep.subr.bf16.mxu1 %v3269_v0 }
 0xe7d   : > { %3048 = vmatpush3.bf16.msra.mxu1 %v3047_v56  ;;  %v1878_v56 = vld [vmem:[#allocation2 + $0x450] sm:$0xff] }
 0xe7e   : > { %3049 = vmatprep.subr.bf16.mxu1 %v3269_v0  ;;  %v3077_v58 = vpack.c.bf16 %v1878_v56, %v1877_v55 }
 0xe81   : > { %3051 = vmatpush3.bf16.msra.mxu1 %v3050_v59  ;;  %v1880_v59 = vld [vmem:[#allocation2 + $0x460] sm:$0xff] }
 0xe82   : > { %3052 = vmatprep.subr.bf16.mxu1 %v3269_v0  ;;  %v3080_v60 = vpack.c.bf16 %v1880_v59, %v1879_v57 }
 0xe85   : > { %3054 = vmatpush3.bf16.msra.mxu1 %v3053_v62  ;;  %v1882_v62 = vld [vmem:[#allocation2 + $0x470] sm:$0xff] }
 0xe86   : > { %3055 = vmatprep.subr.bf16.mxu1 %v3269_v0  ;;  %v3083_v2 = vpack.c.bf16 %v1882_v62, %v1881_v61 }
 0xe89   : > { %3057 = vmatpush3.bf16.msra.mxu1 %v3056_v4  ;;  %v1884_v4 = vld [vmem:[#allocation2 + $0x480] sm:$0xff] }
 0xe8a   : > { %2814 = vmatprep.subr.mxu1 %v3271_v1 }
 0xf47   : > { %v3517_v38 = vpop.f32.mrb[10].mxu1 }
 0xf48   : > { %1423 = vrot.lane.b32.xlu0 %v3517_v38, %s3279_s9  ;;  %v2745_v39 = vpop.f32.mrb[11].mxu1  ;;  %v1415_v40 = vrot.slane %v3517_v38, 1  ;;  %v1414_v42 = vrot.slane %v3517_v38, 7 }
 0xf49   : > { %v1712_v39 = vld [vmem:[#allocation2 + $0x438] sm:$0xff] }
 0xf4a   : > { %v1421_v41 = vsel %vm1420_vm13, 0.0, %v1415_v40  ;;  %v1419_v44 = vsel %vm1418_vm14, 0.0, %v1414_v42  ;;  %v3074_v40 = vpack.c.bf16 %v1712_v39, %v1711_v36  ;;  %v1994_v36 = vld [vmem:[#allocation2 + $0x4e8] sm:$0xff]  ;;  %v1995_v39 = vld [vmem:[#allocation2 + $0x4f0] sm:$0xff] }
 0xf4b   : > { %1427 = vrot.lane.b32.xlu1 %v1421_v41, %s3275_s18  ;;  %v1787_v41 = vld [vmem:[#allocation2 + $0x440] sm:$0xff] }
 0xfba   : > { %v1424_v43 = vpop.permute.xlu0 %1423 }
 0xfbb   : > { %v1430_v45 = vsel %vm871_vm9, %v1419_v44, %v1424_v43 }
 0xfbd   : > { %v1428_v46 = vpop.permute.xlu1 %1427 }
 0xfbe   : > { %v1431_v47 = vsel %vm337_vm5, %v1430_v45, %v1428_v46 }
 0xfbf   : > { %2753 = vmatmul.mubr.msk.f32.vlgmr.msra.gmra.mrb[12].mxu0 %vm1440_vm15, %v1431_v47 }
 0xfc0   : > { %2784 = vmatprep.mubr.msk.f32.mxu0 %vm3270_vm0, %v3271_v1  ;;  %2783 = vmatpush3.msra.mxu0 %v1613_v5  ;;  %v3086_v5 = vpack.c.bf16 %v1884_v4, %v1883_v3 }
 0xfc1   : > { %3058 = vmatprep.subr.bf16.mxu0 %v3269_v0 }
0x1092   : > { %v1510_v7 = vpop.f32.mrb[12].mxu0 }
0x1093   : > { %v1511_v8 = vadd.f32 %v2435_v6, %v1510_v7  ;;  %v2754_v9 = vpop.f32.mrb[13].mxu0  ;;  %v1886_v6 = vld [vmem:[#allocation2 + $0x490] sm:$0xff] }
0x1094   : > { %v1888_v9 = vld [vmem:[#allocation2 + $0x4a0] sm:$0xff] }
0x1095   : > { %v1514_v10 = vmax.f32 %v1511_v8, 0.0 }
0x1097   : > { %1518 = vrot.lane.b32.xlu1 %v1514_v10, %s3276_s21  ;;  %v1516_v11 = vrot.slane %v1514_v10, 1  ;;  %v1515_v12 = vrot.slane %v1514_v10, 7 }
0x1099   : > { %1522 = vrot.lane.b32.xlu0 %v1516_v11, %s3278_s27 }
0x1109   : > { %v1519_v13 = vpop.permute.xlu1 %1518 }
0x110a   : > { %v1525_v14 = vsel %vm365_vm6, %v1515_v12, %v1519_v13 }
0x110b   : > { %v1523_v15 = vpop.permute.xlu0 %1522 }
0x110c   : > { %v1526_v16 = vsel %vm485_vm7, %v1525_v14, %v1523_v15 }
0x110d   : > { %2780 = vmatmul.mubr.msk.f32.vlgmr.msra.gmra.mrb[12].mxu1 %vm575_vm8, %v1526_v16 }
0x110e   : > { %2816 = vmatprep.mubr.msk.f32.mxu1 %vm3270_vm0, %v3271_v1  ;;  %2815 = vmatpush3.msra.mxu1 %v1787_v41  ;;  %v1996_v41 = vld [vmem:[#allocation2 + $0x4f8] sm:$0xff] }
0x110f   : > { %3076 = vmatprep.subr.bf16.mxu1 %v3269_v0 }
0x11e0   : > { %v1608_v17 = vpop.f32.mrb[12].mxu1 }
0x11e1   : > { %v1612_v18 = vmax.f32 %v1608_v17, 0.0  ;;  %v2781_v19 = vpop.f32.mrb[13].mxu1 }
0x11e3   : > { %2785 = vmatmul.mubr.msk.f32.vlgmr.msra.gmra.mrb[14].mxu0 %vm871_vm9, %v1612_v18 }
0x11e4   : > { %2811 = vmatprep.mubr.msk.f32.mxu0 %vm3270_vm0, %v3271_v1  ;;  %3060 = vmatpush3.bf16.msra.mxu0 %v3059_v23  ;;  %v1986_v23 = vld [vmem:[#allocation2 + $0x4a8] sm:$0xff] }
0x11e5   : > { %3061 = vmatprep.subr.bf16.mxu0 %v3269_v0  ;;  %v3095_v26 = vpack.c.bf16 %v1987_v24, %v1986_v23  ;;  %v2109_v23 = vld [vmem:[#allocation2 + $0x590] sm:$0xff] }
0x11e8   : > { %3063 = vmatpush3.bf16.msra.mxu0 %v3062_v25  ;;  %v1988_v25 = vld [vmem:[#allocation2 + $0x4b8] sm:$0xff] }
0x11e9   : > { %3064 = vmatprep.subr.bf16.mxu0 %v3269_v0 }
0x11ec   : > { %3066 = vmatpush3.bf16.msra.mxu0 %v3065_v28  ;;  %v3098_v28 = vpack.c.bf16 %v1989_v27, %v1988_v25  ;;  %v2110_v25 = vld [vmem:[#allocation2 + $0x598] sm:$0xff] }
0x11ed   : > { %3067 = vmatprep.subr.bf16.mxu0 %v3269_v0 }
0x11f0   : > { %3069 = vmatpush3.bf16.msra.mxu0 %v3068_v31  ;;  %v3101_v31 = vpack.c.bf16 %v1991_v30, %v1990_v29  ;;  %v2113_v29 = vld [vmem:[#allocation2 + $0x5b0] sm:$0xff] }
0x11f1   : > { %3070 = vmatprep.subr.bf16.mxu0 %v3269_v0 }
0x11f4   : > { %3072 = vmatpush3.bf16.msra.mxu0 %v3071_v35  ;;  %v3104_v35 = vpack.c.bf16 %v1993_v34, %v1992_v33  ;;  %v2115_v33 = vld [vmem:[#allocation2 + $0x5c0] sm:$0xff] }
0x11f5   : > { %3073 = vmatprep.subr.bf16.mxu0 %v3269_v0 }
0x11f8   : > { %3075 = vmatpush3.bf16.msra.mxu0 %v3074_v40  ;;  %v3107_v40 = vpack.c.bf16 %v1995_v39, %v1994_v36  ;;  %v2117_v36 = vld [vmem:[#allocation2 + $0x5d0] sm:$0xff] }
0x11f9   : > { %3094 = vmatprep.subr.bf16.mxu0 %v3269_v0 }
0x12b6   : > { %v1683_v42 = vpop.f32.mrb[14].mxu0 }
0x12b7   : > { %v1687_v43 = vadd.f32 %v1683_v42, %v1511_v8  ;;  %v2786_v44 = vpop.f32.mrb[15].mxu0  ;;  %v1887_v8 = vld [vmem:[#allocation2 + $0x498] sm:$0xff]  ;;  %v1997_v42 = vld [vmem:[#allocation2 + $0x500] sm:$0xff] }
0x12b8   : > { %v3092_v10 = vpack.c.bf16 %v1888_v9, %v1887_v8  ;;  %v1998_v44 = vld [vmem:[#allocation2 + $0x508] sm:$0xff]  ;;  %v2099_v8 = vld [vmem:[#allocation2 + $0x540] sm:$0xff] }
0x12b9   : > { %v1688_v45 = vmax.f32 %v1687_v43, 0.0 }
0x12bb   : > { %1692 = vrot.lane.b32.xlu1 %v1688_v45, %s3276_s21  ;;  %v1690_v46 = vrot.slane %v1688_v45, 1  ;;  %v1689_v47 = vrot.slane %v1688_v45, 7  ;;  %v1999_v45 = vld [vmem:[#allocation2 + $0x510] sm:$0xff] }
0x12bd   : > { %1696 = vrot.lane.b32.xlu0 %v1690_v46, %s3278_s27  ;;  %v3113_v46 = vpack.c.bf16 %v1999_v45, %v1998_v44 }
0x132d   : > { %v1693_v48 = vpop.permute.xlu1 %1692 }
0x132e   : > { %v1699_v49 = vsel %vm365_vm6, %v1689_v47, %v1693_v48  ;;  %v2000_v47 = vld [vmem:[#allocation2 + $0x518] sm:$0xff]  ;;  %v2001_v48 = vld [vmem:[#allocation2 + $0x520] sm:$0xff] }
0x132f   : > { %v1697_v50 = vpop.permute.xlu0 %1696 }
0x1330   : > { %v1700_v51 = vsel %vm485_vm7, %v1699_v49, %v1697_v50  ;;  %v3116_v49 = vpack.c.bf16 %v2001_v48, %v2000_v47  ;;  %v2441_v50 = vld [vmem:[%s3675_s2 + $0x8] ss:$0 sm:$0xff] }
0x1331   : > { %2812 = vmatmul.mubr.msk.f32.vlgmr.msra.gmra.mrb[16].mxu0 %vm575_vm8, %v1700_v51 }
0x1332   : > { %2878 = vmatprep.mubr.msk.f32.mxu0 %vm3270_vm0, %v3271_v1  ;;  %3096 = vmatpush3.bf16.msra.mxu0 %v3095_v26  ;;  %v2111_v26 = vld [vmem:[#allocation2 + $0x5a0] sm:$0xff] }
0x1333   : > { %3097 = vmatprep.subr.bf16.mxu0 %v3269_v0  ;;  %v3140_v27 = vpack.c.bf16 %v2111_v26, %v2110_v25  ;;  %v2236_v25 = vld [vmem:[#allocation2 + $0x680] sm:$0xff] }
0x1336   : > { %3099 = vmatpush3.bf16.msra.mxu0 %v3098_v28  ;;  %v2112_v28 = vld [vmem:[#allocation2 + $0x5a8] sm:$0xff] }
0x1337   : > { %3100 = vmatprep.subr.bf16.mxu0 %v3269_v0  ;;  %v3143_v30 = vpack.c.bf16 %v2113_v29, %v2112_v28  ;;  %v2444_v28 = vld [vmem:[%s3675_s2 + $0xa] ss:$0 sm:$0xff] }
0x133a   : > { %3102 = vmatpush3.bf16.msra.mxu0 %v3101_v31  ;;  %v2114_v31 = vld [vmem:[#allocation2 + $0x5b8] sm:$0xff] }
0x133b   : > { %3103 = vmatprep.subr.bf16.mxu0 %v3269_v0  ;;  %v3146_v34 = vpack.c.bf16 %v2115_v33, %v2114_v31 }
0x133e   : > { %3105 = vmatpush3.bf16.msra.mxu0 %v3104_v35  ;;  %v2116_v35 = vld [vmem:[#allocation2 + $0x5c8] sm:$0xff] }
0x133f   : > { %3106 = vmatprep.subr.bf16.mxu0 %v3269_v0  ;;  %v3149_v39 = vpack.c.bf16 %v2117_v36, %v2116_v35 }
0x1342   : > { %3108 = vmatpush3.bf16.msra.mxu0 %v3107_v40  ;;  %v2118_v40 = vld [vmem:[#allocation2 + $0x5d8] sm:$0xff] }
0x1343   : > { %3109 = vmatprep.subr.bf16.mxu0 %v3269_v0 }
0x1404   : > { %v1782_v52 = vpop.f32.mrb[16].mxu0 }
0x1405   : > { %v1786_v53 = vmax.f32 %v1782_v52, 0.0  ;;  %v2813_v54 = vpop.f32.mrb[17].mxu0 }
0x1407   : > { %2817 = vmatmul.mubr.msk.f32.vlgmr.msra.gmra.mrb[14].mxu1 %vm871_vm9, %v1786_v53 }
0x1408   : > { %2843 = vmatprep.mubr.msk.f32.mxu1 %vm3270_vm0, %v3271_v1  ;;  %3078 = vmatpush3.bf16.msra.mxu1 %v3077_v58  ;;  %v1885_v1 = vld [vmem:[#allocation2 + $0x488] sm:$0xff]  ;;  %vm1412_vm0 = vcmask 131072  }
0x1409   : > { %3079 = vmatprep.subr.bf16.mxu1 %v3269_v0  ;;  %v3089_v7 = vpack.c.bf16 %v1886_v6, %v1885_v1  ;;  %v2097_v1 = vld [vmem:[#allocation2 + $0x530] sm:$0xff]  ;;  %v2098_v6 = vld [vmem:[#allocation2 + $0x538] sm:$0xff] }
0x140a   : > { %v3122_v9 = vpack.c.bf16 %v2099_v8, %v2098_v6  ;;  %v2226_v8 = vld [vmem:[#allocation2 + $0x630] sm:$0xff] }
0x140c   : > { %3081 = vmatpush3.bf16.msra.mxu1 %v3080_v60 }
0x140d   : > { %3082 = vmatprep.subr.bf16.mxu1 %v3269_v0 }
0x1410   : > { %3084 = vmatpush3.bf16.msra.mxu1 %v3083_v2 }
0x1411   : > { %3085 = vmatprep.subr.bf16.mxu1 %v3269_v0 }
0x1414   : > { %3087 = vmatpush3.bf16.msra.mxu1 %v3086_v5  ;;  %v2096_v5 = vld [vmem:[#allocation2 + $0x528] sm:$0xff] }
0x1415   : > { %3088 = vmatprep.subr.bf16.mxu1 %v3269_v0 }
0x1418   : > { %3090 = vmatpush3.bf16.msra.mxu1 %v3089_v7  ;;  %v3119_v7 = vpack.c.bf16 %v2097_v1, %v2096_v5  ;;  %v2223_v5 = vld [vmem:[#allocation2 + $0x618] sm:$0xff]  ;;  %v2224_v1 = vld [vmem:[#allocation2 + $0x620] sm:$0xff] }
0x1419   : > { %3091 = vmatprep.subr.bf16.mxu1 %v3269_v0  ;;  %v3164_v6 = vpack.c.bf16 %v2224_v1, %v2223_v5 }
0x141c   : > { %3093 = vmatpush3.bf16.msra.mxu1 %v3092_v10  ;;  %v2100_v10 = vld [vmem:[#allocation2 + $0x548] sm:$0xff] }
0x141d   : > { %3118 = vmatprep.subr.bf16.mxu1 %v3269_v0 }
0x14da   : > { %v1857_v11 = vpop.f32.mrb[14].mxu1 }
0x14db   : > { %v1861_v12 = vadd.f32 %v1857_v11, %v1687_v43  ;;  %v2818_v13 = vpop.f32.mrb[15].mxu1  ;;  %v3110_v43 = vpack.c.bf16 %v1997_v42, %v1996_v41  ;;  %v2101_v11 = vld [vmem:[#allocation2 + $0x550] sm:$0xff]  ;;  %v2119_v41 = vld [vmem:[#allocation2 + $0x5e0] sm:$0xff] }
0x14dc   : > { %v2102_v13 = vld [vmem:[#allocation2 + $0x558] sm:$0xff]  ;;  %v3152_v42 = vpack.c.bf16 %v2119_v41, %v2118_v40 }
0x14dd   : > { %v1862_v14 = vmax.f32 %v1861_v12, 0.0  ;;  %3111 = vmatpush3.bf16.msra.mxu0 %v3110_v43  ;;  %v3125_v12 = vpack.c.bf16 %v2101_v11, %v2100_v10  ;;  %v2443_v43 = vld [vmem:[%s3675_s2 + $0x9] ss:$0 sm:$0xff]  ;;  %v2227_v10 = vld [vmem:[#allocation2 + $0x638] sm:$0xff]  ;;  %v2228_v11 = vld [vmem:[#allocation2 + $0x640] sm:$0xff] }
0x14de   : > { %3112 = vmatprep.subr.bf16.mxu0 %v3269_v0 }
0x14df   : > { %1868 = vrot.lane.b32.xlu1 %v1862_v14, %s3276_s21  ;;  %v1864_v15 = vrot.slane %v1862_v14, 1  ;;  %v1863_v17 = vrot.slane %v1862_v14, 7  ;;  %v2103_v14 = vld [vmem:[#allocation2 + $0x560] sm:$0xff] }
0x14e1   : > { %v1866_v16 = vsel %vm1420_vm13, 0.0, %v1864_v15  ;;  %v1865_v19 = vsel %vm1418_vm14, 0.0, %v1863_v17  ;;  %3114 = vmatpush3.bf16.msra.mxu0 %v3113_v46  ;;  %v3128_v15 = vpack.c.bf16 %v2103_v14, %v2102_v13  ;;  %v2105_v17 = vld [vmem:[#allocation2 + $0x570] sm:$0xff]  ;;  %v2229_v13 = vld [vmem:[#allocation2 + $0x648] sm:$0xff] }
0x14e2   : > { %1872 = vrot.lane.b32.xlu0 %v1866_v16, %s3278_s27  ;;  %3115 = vmatprep.subr.bf16.mxu0 %v3269_v0  ;;  %v2104_v16 = vld [vmem:[#allocation2 + $0x568] sm:$0xff]  ;;  %v2230_v14 = vld [vmem:[#allocation2 + $0x650] sm:$0xff]  ;;  %s213_s27 = scalar_lea.vmem %s3676_s3, %s2413_s7 }
0x14e5   : > { %3117 = vmatpush3.bf16.msra.mxu0 %v3116_v49 }
0x14e6   : > { %3154 = vmatprep.subr.bf16.mxu0 %v3269_v0 }
0x1551   : > { %v1869_v18 = vpop.permute.xlu1 %1868 }
0x1552   : > { %v1875_v20 = vsel %vm365_vm6, %v1865_v19, %v1869_v18  ;;  %v3131_v18 = vpack.c.bf16 %v2105_v17, %v2104_v16  ;;  %v2106_v19 = vld [vmem:[#allocation2 + $0x578] sm:$0xff]  ;;  %v2232_v17 = vld [vmem:[#allocation2 + $0x660] sm:$0xff] }
0x1553   : > { %v2231_v16 = vld [vmem:[#allocation2 + $0x658] sm:$0xff] }
0x1554   : > { %v1873_v21 = vpop.permute.xlu0 %1872 }
0x1555   : > { %v1876_v22 = vsel %vm485_vm7, %v1875_v20, %v1873_v21  ;;  %v2107_v20 = vld [vmem:[#allocation2 + $0x580] sm:$0xff] }
0x1556   : > { %2844 = vmatmul.mubr.msk.f32.vlgmr.msra.gmra.mrb[16].mxu1 %vm575_vm8, %v1876_v22  ;;  %v3134_v21 = vpack.c.bf16 %v2107_v20, %v2106_v19  ;;  %v2108_v22 = vld [vmem:[#allocation2 + $0x588] sm:$0xff]  ;;  %v2234_v20 = vld [vmem:[#allocation2 + $0x670] sm:$0xff] }
0x1557   : > { %3120 = vmatpush1.bf16.msra.mxu1 %v3119_v7  ;;  %v3137_v24 = vpack.c.bf16 %v2109_v23, %v2108_v22  ;;  %v2225_v7 = vld [vmem:[#allocation2 + $0x628] sm:$0xff]  ;;  %v1400_v22 = vsel %vm337_vm5, %v3507_v32, 0.0 }
0x1558   : > { %3121 = vmatprep.subr.bf16.mxu1 %v3269_v0  ;;  %v2233_v19 = vld [vmem:[#allocation2 + $0x668] sm:$0xff]  ;;  %v1401_v23 = vrot.slane %v1400_v22, 4 }
0x155b   : > { %3123 = vmatpush1.bf16.msra.mxu1 %v3122_v9  ;;  %v3167_v9 = vpack.c.bf16 %v2226_v8, %v2225_v7 }
0x155c   : > { %3124 = vmatprep.subr.bf16.mxu1 %v3269_v0 }
0x155f   : > { %3126 = vmatpush1.bf16.msra.mxu1 %v3125_v12  ;;  %v3170_v12 = vpack.c.bf16 %v2228_v11, %v2227_v10 }
0x1560   : > { %3127 = vmatprep.subr.bf16.mxu1 %v3269_v0 }
0x1563   : > { %3129 = vmatpush1.bf16.msra.mxu1 %v3128_v15  ;;  %v3173_v15 = vpack.c.bf16 %v2230_v14, %v2229_v13 }
0x1564   : > { %3130 = vmatprep.subr.bf16.mxu1 %v3269_v0 }
0x1567   : > { %3132 = vmatpush1.bf16.msra.mxu1 %v3131_v18  ;;  %v3176_v18 = vpack.c.bf16 %v2232_v17, %v2231_v16 }
0x1568   : > { %3133 = vmatprep.subr.bf16.mxu1 %v3269_v0 }
0x156b   : > { %3135 = vmatpush1.bf16.msra.mxu1 %v3134_v21  ;;  %v3179_v21 = vpack.c.bf16 %v2234_v20, %v2233_v19 }
0x156c   : > { %3136 = vmatprep.subr.bf16.mxu1 %v3269_v0 }
0x156f   : > { %3138 = vmatpush1.bf16.msra.mxu1 %v3137_v24  ;;  %v2235_v24 = vld [vmem:[#allocation2 + $0x678] sm:$0xff] }
0x1570   : > { %3139 = vmatprep.subr.bf16.mxu1 %v3269_v0  ;;  %v3182_v26 = vpack.c.bf16 %v2236_v25, %v2235_v24 }
0x1573   : > { %3141 = vmatpush1.bf16.msra.mxu1 %v3140_v27  ;;  %v1402_v27 = vadd.f32 %v1401_v23, %v1400_v22 }
0x1574   : > { %3142 = vmatprep.subr.bf16.mxu1 %v3269_v0 }
0x1575   : > { %v1403_v29 = vrot.slane %v1402_v27, 2 }
0x1577   : > { %3144 = vmatpush1.bf16.msra.mxu1 %v3143_v30  ;;  %v1404_v35 = vadd.f32 %v1403_v29, %v1402_v27 }
0x1578   : > { %3145 = vmatprep.subr.bf16.mxu1 %v3269_v0 }
0x1579   : > { %v1405_v40 = vrot.slane %v1404_v35, 1 }
0x157b   : > { %3147 = vmatpush1.bf16.msra.mxu1 %v3146_v34  ;;  %v1406_v41 = vadd.f32 %v1405_v40, %v1404_v35 }
0x157c   : > { %3148 = vmatprep.subr.bf16.mxu1 %v3269_v0 }
0x157f   : > { %3150 = vmatpush1.bf16.msra.mxu1 %v3149_v39 }
0x1580   : > { %3151 = vmatprep.subr.bf16.mxu1 %v3269_v0 }
0x1583   : > { %3153 = vmatpush1.bf16.msra.mxu1 %v3152_v42  ;;  %v1389_v42 = vsub.f32 %v3517_v38, %v3491_v63 }
0x1629   : > { %v1963_v51 = vpop.f32.mrb[16].mxu1 }
0x162a   : > { %v1964_v52 = vadd.f32 %v2441_v50, %v1963_v51  ;;  %v2845_v53 = vpop.f32.mrb[17].mxu1 }
0x162c   : > { %v1967_v54 = vmax.f32 %v1964_v52, 0.0 }
0x162e   : > { %v1968_v55 = vrot.slane %v1967_v54, 7  ;;  %v1969_v56 = vrot.slane %v1967_v54, 1  ;;  %1977 = vrot.lane.b32.xlu0 %v1967_v54, %s3276_s21 }
0x1630   : > { %v1970_v57 = vsel %vm1418_vm14, 0.0, %v1968_v55  ;;  %v1971_v58 = vsel %vm1420_vm13, 0.0, %v1969_v56 }
0x1631   : > { %v3221_v59 = vpack.i.bf16 %v1971_v58, %v1970_v57  ;;  %v2217_v57 = vld [vmem:[#allocation2 + $0x5e8] sm:$0xff]  ;;  %v2218_v58 = vld [vmem:[#allocation2 + $0x5f0] sm:$0xff] }
0x1633   : > { %3222 = vrot.lane.b32.xlu1 %v3221_v59, %s3277_s24  ;;  %v2219_v59 = vld [vmem:[#allocation2 + $0x5f8] sm:$0xff] }
0x16a0   : > { %v1978_v2 = vpop.permute.xlu0 %1977 }
0x16a5   : > { %v3223_v60 = vpop.permute.xlu1 %3222 }
0x16a6   : > { %v3225_v61 = vunpack.i.h.bf16 %v3223_v60  ;;  %v3224_v62 = vunpack.i.l.bf16 %v3223_v60  ;;  %v3155_v60 = vpack.c.bf16 %v2218_v58, %v2217_v57 }
0x16a8   : > { %v1984_v3 = vsel %vm365_vm6, %v3224_v62, %v1978_v2  ;;  %v2221_v2 = vld [vmem:[#allocation2 + $0x608] sm:$0xff] }
0x16a9   : > { %v1985_v4 = vsel %vm575_vm8, %v1984_v3, %v3225_v61  ;;  %v2220_v61 = vld [vmem:[#allocation2 + $0x600] sm:$0xff]  ;;  %v2222_v3 = vld [vmem:[#allocation2 + $0x610] sm:$0xff] }
0x16aa   : > { %2879 = vmatmul.mubr.f32.vlgmr.msra.gmra.mrb[18].mxu0 %v1985_v4  ;;  %v3158_v62 = vpack.c.bf16 %v2220_v61, %v2219_v59  ;;  %v3161_v4 = vpack.c.bf16 %v2222_v3, %v2221_v2 }
0x16ab   : > { %3156 = vmatpush1.bf16.msra.mxu0 %v3155_v60 }
0x16ac   : > { %3157 = vmatprep.subr.bf16.mxu0 %v3269_v0 }
0x16af   : > { %3159 = vmatpush1.bf16.msra.mxu0 %v3158_v62 }
0x16b0   : > { %3160 = vmatprep.subr.bf16.mxu0 %v3269_v0 }
0x16b3   : > { %3162 = vmatpush1.bf16.msra.mxu0 %v3161_v4 }
0x16b4   : > { %3163 = vmatprep.subr.bf16.mxu0 %v3269_v0 }
0x16b7   : > { %3165 = vmatpush1.bf16.msra.mxu0 %v3164_v6 }
0x16b8   : > { %3166 = vmatprep.subr.bf16.mxu0 %v3269_v0 }
0x16bb   : > { %3168 = vmatpush1.bf16.msra.mxu0 %v3167_v9 }
0x16bc   : > { %3169 = vmatprep.subr.bf16.mxu0 %v3269_v0 }
0x16bf   : > { %3171 = vmatpush1.bf16.msra.mxu0 %v3170_v12 }
0x16c0   : > { %3172 = vmatprep.subr.bf16.mxu0 %v3269_v0 }
0x16c3   : > { %3174 = vmatpush1.bf16.msra.mxu0 %v3173_v15 }
0x16c4   : > { %3175 = vmatprep.subr.bf16.mxu0 %v3269_v0 }
0x16c7   : > { %3177 = vmatpush1.bf16.msra.mxu0 %v3176_v18 }
0x16c8   : > { %3178 = vmatprep.subr.bf16.mxu0 %v3269_v0 }
0x16cb   : > { %3180 = vmatpush1.bf16.msra.mxu0 %v3179_v21 }
0x16cc   : > { %3181 = vmatprep.subr.bf16.mxu0 %v3269_v0 }
0x16cf   : > { %3183 = vmatpush1.bf16.msra.mxu0 %v3182_v26 }
0x177d   : > { %v2073_v44 = vpop.f32.mrb[18].mxu0 }
0x177e   : > { %v2074_v45 = vadd.f32 %v2443_v43, %v2073_v44  ;;  %v2880_v46 = vpop.f32.mrb[19].mxu0  ;;  %v1390_v43 = vmul.f32 %v1389_v42, %v1389_v42 }
0x1780   : > { %v2077_v47 = vmax.f32 %v2074_v45, 0.0  ;;  %v1391_v44 = vsel %vm871_vm9, %v1390_v43, 0.0 }
0x1782   : > { %2087 = vrot.lane.b32.xlu1 %v2077_v47, %s3276_s21  ;;  %v2079_v48 = vrot.slane %v2077_v47, 1  ;;  %v2078_v49 = vrot.slane %v2077_v47, 7 }
0x1784   : > { %v2081_v50 = vsel %vm1420_vm13, 0.0, %v2079_v48  ;;  %v2080_v51 = vsel %vm1418_vm14, 0.0, %v2078_v49 }
0x1785   : > { %2091 = vrot.lane.b32.xlu0 %v2081_v50, %s3276_s21 }
0x1786   : > { %2083 = vrot.lane.b32.xlu1 %v2080_v51, %s3276_s21 }
0x17f4   : > { %v2088_v52 = vpop.permute.xlu1 %2087 }
0x17f7   : > { %v2092_v53 = vpop.permute.xlu0 %2091 }
0x17f8   : > { %v2095_v54 = vsel %vm365_vm6, %v2088_v52, %v2092_v53  ;;  %v2084_v55 = vpop.permute.xlu1 %2083 }
0x17f9   : > { %v2094_v56 = vsel %vm365_vm6, %v2084_v55, %v2088_v52  ;;  %2445 = vmatprep.mubr.msk.f32.mxu1 %vm485_vm7, %v2095_v54 }
0x17fa   : > { %2193 = vmatmul.mubr.f32.vlgmr.msra.gmra.mrb[18].mxu1 %v2094_v56  ;;  %v2446_v56 = vld [vmem:[%s3675_s2 + $0xb] ss:$0 sm:$0xff] }
0x18cd   : > { %v2194_v30 = vpop.f32.mrb[18].mxu1 }
0x18ce   : > { %v2195_v31 = vadd.f32 %v2444_v28, %v2194_v30  ;;  %v2196_v33 = vpop.f32.mrb[19].mxu1 }
0x18d0   : > { %v2198_v34 = vmax.f32 %v2195_v31, 0.0 }
0x18d2   : > { %2208 = vrot.lane.b32.xlu0 %v2198_v34, %s3275_s18  ;;  %v2200_v0 = vrot.slane %v2198_v34, 1  ;;  %v2199_v32 = vrot.slane %v2198_v34, 7 }
0x18d4   : > { %v2202_v36 = vsel %vm1420_vm13, 0.0, %v2200_v0  ;;  %v2201_v39 = vsel %vm1418_vm14, 0.0, %v2199_v32 }
0x18d5   : > { %2212 = vrot.lane.b32.xlu1 %v2202_v36, %s3275_s18 }
0x18d6   : > { %2204 = vrot.lane.b32.xlu0 %v2201_v39, %s3275_s18 }
0x18da   : > { %1408 = vrot.lane.b32.xlu0 %v1406_v41, %s3274_s13 }
0x18f9   : > { %1392 = vadd.xlane.f32.xlu1 %v1391_v44 }
0x1944   : > { %v2209_v45 = vpop.permute.xlu0 %2208 }
0x1947   : > { %v2213_v46 = vpop.permute.xlu1 %2212 }
0x1948   : > { %v2216_v37 = vsel %vm337_vm5, %v2209_v45, %v2213_v46  ;;  %v2205_v47 = vpop.permute.xlu0 %2204 }
0x1949   : > { %v2215_v48 = vsel %vm337_vm5, %v2205_v47, %v2209_v45  ;;  %2447 = vmatprep.mubr.msk.f32.mxu0 %vm365_vm6, %v2216_v37 }
0x194a   : > { %2310 = vmatmul.mubr.f32.vlgmr.msra.gmra.mrb[20].mxu0 %v2215_v48 }
0x194c   : > { %v1409_v54 = vpop.permute.xlu0 %1408 }
0x1986   : > { %v1393_v49 = vpop.xlane.xlu1 %1392 }
0x1987   : > { %v1394_v50 = vrot.slane %v1393_v49, 4 }
0x1989   : > { %v1395_v51 = vadd.f32 %v1394_v50, %v1393_v49 }
0x198b   : > { %v1396_v63 = vrot.slane %v1395_v51, 2 }
0x198d   : > { %v1397_v38 = vadd.f32 %v1396_v63, %v1395_v51 }
0x198f   : > { %v1398_v52 = vrot.slane %v1397_v38, 1 }
0x1991   : > { %v1399_v53 = vadd.f32 %v1398_v52, %v1397_v38 }
0x1993   : > { %v1411_v55 = vsel %vm232_vm2, %v1399_v53, %v1409_v54 }
0x1994   : > { %1413 = vst.msk [vmem:[%s216_s22] sm:$0x1] %vm1412_vm0, %v1411_v55 }
0x1a1d   : > { %v2311_v57 = vpop.f32.mrb[20].mxu0 }
0x1a1e   : > { %v2312_v58 = vadd.f32 %v2446_v56, %v2311_v57  ;;  %v2313_v59 = vpop.f32.mrb[21].mxu0 }
0x1a20   : > { %2315 = vst.msk [vmem:[%s213_s27] sm:$0xff] %vm337_vm5, %v2312_v58 }
0x1a21 PF: > { %s16_s15 = sadd.s32 1, %s3264_s15  }
0x1a22   : > { %p13_p3 = scmp.ge.s32.totalorder %s16_s15, 4  }
0x1a24   :  { %15 = sbr.rel (!%p13_p3) target bundleno = 1 (0x1), region = 79 }
0x1a2b   :  { %2347 = vsyncpa [#allocation3], 1 }
0x1a2c   :  { %2349 = vsyncpa [#allocation3 + $0x1], 1 }

</bundles_post_ra>
